<compile_context>
chip_gen: v7x
topology: tpu7x:2x2x1
jax: 0.10.0
libtpu: 0.0.40
codegen_flags: <defaults>
</compile_context>

<pallas_src>
import math

import jax
import jax.numpy as jnp
from jax.experimental import pallas as pl
from jax.experimental.pallas import tpu as pltpu


def _round_up(x, m):
    return ((x + m - 1) // m) * m


def _prf_kernel(thr_ref, yhat_ref, ypos_ref, tp_ref, t1_ref):
    # thr_ref : (1, T)      f32  thresholds on the lane axis (constant block)
    # yhat_ref: (Bt, HWt)   f32  prediction slab
    # ypos_ref: (Bt, HWt)   f32  predictions pre-masked by ground truth
    #                            (== yhat where (Y.int() & 1) == 1, else -inf)
    # tp_ref  : (Bt, T)     f32  accumulator: sum((yhat >= thr).int() & Y.int()) over HW
    # t1_ref  : (Bt, T)     f32  accumulator: sum(yhat >= thr) over HW
    j = pl.program_id(1)  # trailing HW reduction axis ("arbitrary")

    @pl.when(j == 0)
    def _():
        tp_ref[...] = jnp.zeros_like(tp_ref)
        t1_ref[...] = jnp.zeros_like(t1_ref)

    thr = thr_ref[...]                    # (1, T)
    yhat = yhat_ref[...]                  # (Bt, HWt)
    ypos = ypos_ref[...]                  # (Bt, HWt)

    # (Bt, HWt, 1) >= (1, 1, T) -> (Bt, HWt, T); reduce the HW (sublane) axis.
    ge1 = yhat[:, :, None] >= thr[None, :, :]
    t1_ref[...] += jnp.sum(jnp.where(ge1, 1.0, 0.0), axis=1)

    ge2 = ypos[:, :, None] >= thr[None, :, :]
    tp_ref[...] += jnp.sum(jnp.where(ge2, 1.0, 0.0), axis=1)


def prf_forward(y_pred, y_true, steps=255, end=1.0, hw_tile=512, b_tile=8):
    """JAX/Pallas equivalent of PRF.forward(_Y) with self.Y = y_true."""
    assert y_pred.shape == y_true.shape
    *lead_dims, h, w = y_pred.shape
    bsz = math.prod(lead_dims) if lead_dims else 1
    bsz = max(bsz, 1)
    hw = h * w

    yhat = jnp.reshape(y_pred, (bsz, hw)).astype(jnp.float32)
    ygt = jnp.reshape(y_true, (bsz, hw)).astype(jnp.float32)

    # Exact torch semantics: (yhat >= thr).int() & Y.int()  ==  (yhat >= thr) * (Y.int() & 1)
    neg = float("-inf")
    pos_mask = (ygt.astype(jnp.int32) & 1) == 1
    ypos = jnp.where(pos_mask, yhat, jnp.float32(neg))

    # Thresholds padded to a single lane-dense block (255 -> 256).
    thresholds = jnp.linspace(0.0, end, steps).astype(jnp.float32)
    t_pad = _round_up(steps, 128)
    thr_row = jnp.full((1, t_pad), jnp.inf, jnp.float32).at[0, :steps].set(thresholds)

    # Tile sizes: lane axis multiple of 128; sublane axis multiple of 8 or full.
    if bsz <= 8:
        b_tile = bsz
        b_pad = bsz
    else:
        b_tile = _round_up(min(b_tile, bsz), 8)
        b_pad = _round_up(bsz, b_tile)
    hw_tile = min(_round_up(hw_tile, 128), _round_up(hw, 128))
    hw_pad = _round_up(hw, hw_tile)

    if (b_pad, hw_pad) != (bsz, hw):
        pad = ((0, b_pad - bsz), (0, hw_pad - hw))
        # -inf padding is never >= any threshold -> contributes 0 to every count.
        yhat = jnp.pad(yhat, pad, constant_values=neg)
        ypos = jnp.pad(ypos, pad, constant_values=neg)

    grid = (b_pad // b_tile, hw_pad // hw_tile)

    tp, t1 = pl.pallas_call(
        _prf_kernel,
        out_shape=(
            jax.ShapeDtypeStruct((b_pad, t_pad), jnp.float32),
            jax.ShapeDtypeStruct((b_pad, t_pad), jnp.float32),
        ),
        grid_spec=pltpu.PrefetchScalarGridSpec(
            num_scalar_prefetch=0,
            grid=grid,
            in_specs=[
                pl.BlockSpec((1, t_pad), lambda i, j: (0, 0)),         # thresholds
                pl.BlockSpec((b_tile, hw_tile), lambda i, j: (i, j)),  # predictions
                pl.BlockSpec((b_tile, hw_tile), lambda i, j: (i, j)),  # masked predictions
            ],
            out_specs=[
                pl.BlockSpec((b_tile, t_pad), lambda i, j: (i, 0)),    # TP accumulator
                pl.BlockSpec((b_tile, t_pad), lambda i, j: (i, 0)),    # T1 accumulator
            ],
        ),
        compiler_params=pltpu.CompilerParams(
            dimension_semantics=("parallel", "arbitrary"),
        ),
    )(thr_row, yhat, ypos)

    tp = tp[:bsz, :steps]                             # (B, steps)
    t1 = t1[:bsz, :steps]                             # (B, steps)
    t2 = jnp.sum(ygt, axis=-1, keepdims=True)         # (B, 1), threshold independent

    # Glue: per-threshold batch means and F-measure (returned as stacked
    # arrays rather than Python lists of 0-d tensors).
    P = jnp.mean(tp / (t1 + 1e-9), axis=0)            # (steps,)
    R = jnp.mean(tp / (t2 + 1e-9), axis=0)            # (steps,)
    F = 1.3 * P * R / (R + 0.3 * P + 1e-9)            # (steps,)
    return {"P": P, "R": R, "F": F}


if __name__ == "__main__":
    key = jax.random.PRNGKey(0)
    k1, k2 = jax.random.split(key)
    B, H, W = 2, 16, 16
    y_pred = jax.random.uniform(k1, (B, H, W), dtype=jnp.float32)            # _Y in [0, 1)
    y_true = (jax.random.uniform(k2, (B, H, W)) > 0.5).astype(jnp.float32)   # binary self.Y

    out = prf_forward(y_pred, y_true, steps=255, end=1.0)
    jax.block_until_ready(out)

    # Pure-JAX reference of the PyTorch forward for verification.
    thr = jnp.linspace(0.0, 1.0, 255).astype(jnp.float32)
    yp = y_pred.reshape(B, -1)
    yt = y_true.reshape(B, -1).astype(jnp.int32)
    ge = (yp[None, :, :] >= thr[:, None, None]).astype(jnp.int32)            # (T, B, HW)
    TP = jnp.sum(ge & yt[None], axis=-1).astype(jnp.float32)                 # (T, B)
    T1 = jnp.sum(ge, axis=-1).astype(jnp.float32)                            # (T, B)
    T2 = jnp.sum(y_true.reshape(B, -1), axis=-1)                             # (B,)
    P_ref = jnp.mean(TP / (T1 + 1e-9), axis=-1)
    R_ref = jnp.mean(TP / (T2[None, :] + 1e-9), axis=-1)
    F_ref = 1.3 * P_ref * R_ref / (R_ref + 0.3 * P_ref + 1e-9)

    assert jnp.allclose(out["P"], P_ref, atol=1e-6), "P mismatch"
    assert jnp.allclose(out["R"], R_ref, atol=1e-6), "R mismatch"
    assert jnp.allclose(out["F"], F_ref, atol=1e-6), "F mismatch"
    print("KERNEL_OK")
</pallas_src>

<mosaic_0001>
module attributes {stable_mosaic.version = 11 : i64} {
  func.func @_prf_kernel(%arg0: i32, %arg1: i32, %arg2: memref<1x256xf32, #tpu.memory_space<vmem>>, %arg3: memref<2x256xf32, #tpu.memory_space<vmem>>, %arg4: memref<2x256xf32, #tpu.memory_space<vmem>>, %arg5: memref<2x256xf32, #tpu.memory_space<vmem>>, %arg6: memref<2x256xf32, #tpu.memory_space<vmem>>) attributes {dimension_semantics = [#tpu.dimension_semantics<parallel>, #tpu.dimension_semantics<arbitrary>], iteration_bounds = array<i64: 1, 1>, scalar_prefetch = 0 : i64, scratch_operands = 0 : i64, tpu.core_type = #tpu.core_type<tc>, window_params = [{pipeline_mode = #tpu.pipeline_mode<synchronous>, transform_indices = @transform_0, window_bounds = array<i64: 1, 256>}, {transform_indices = @transform_1, window_bounds = array<i64: 2, 256>}, {transform_indices = @transform_2, window_bounds = array<i64: 2, 256>}, {transform_indices = @transform_3, window_bounds = array<i64: 2, 256>}, {transform_indices = @transform_4, window_bounds = array<i64: 2, 256>}]} {
    %c0_i32 = arith.constant 0 : i32
    %0 = arith.cmpi eq, %arg1, %c0_i32 : i32
    %1 = arith.extui %0 : i1 to i32
    %c0_i32_0 = arith.constant 0 : i32
    %2 = arith.cmpi ne, %1, %c0_i32_0 : i32
    scf.if %2 {
      %cst_19 = arith.constant 0.000000e+00 : f32
      %30 = vector.broadcast %cst_19 : f32 to vector<2x256xf32>
      %c0_20 = arith.constant 0 : index
      %c0_21 = arith.constant 0 : index
      %31 = vector.load %arg5[%c0_20, %c0_21] : memref<2x256xf32, #tpu.memory_space<vmem>>, vector<2x256xf32>
      tpu.vector_store %arg5[%c0_20, %c0_21], %30 {strides = array<i32>} : memref<2x256xf32, #tpu.memory_space<vmem>>, vector<2x256xf32>,
      %cst_22 = arith.constant 0.000000e+00 : f32
      %32 = vector.broadcast %cst_22 : f32 to vector<2x256xf32>
      %c0_23 = arith.constant 0 : index
      %c0_24 = arith.constant 0 : index
      %33 = vector.load %arg6[%c0_23, %c0_24] : memref<2x256xf32, #tpu.memory_space<vmem>>, vector<2x256xf32>
      tpu.vector_store %arg6[%c0_23, %c0_24], %32 {strides = array<i32>} : memref<2x256xf32, #tpu.memory_space<vmem>>, vector<2x256xf32>,
    } else {
    }
    %c0 = arith.constant 0 : index
    %c0_1 = arith.constant 0 : index
    %3 = vector.load %arg2[%c0, %c0_1] : memref<1x256xf32, #tpu.memory_space<vmem>>, vector<1x256xf32>
    %c0_2 = arith.constant 0 : index
    %c0_3 = arith.constant 0 : index
    %4 = vector.load %arg3[%c0_2, %c0_3] : memref<2x256xf32, #tpu.memory_space<vmem>>, vector<2x256xf32>
    %c0_4 = arith.constant 0 : index
    %c0_5 = arith.constant 0 : index
    %5 = vector.load %arg4[%c0_4, %c0_5] : memref<2x256xf32, #tpu.memory_space<vmem>>, vector<2x256xf32>
    %6 = vector.shape_cast %4 : vector<2x256xf32> to vector<2x256x1xf32>
    %7 = vector.shape_cast %3 : vector<1x256xf32> to vector<1x1x256xf32>
    %8 = vector.broadcast %6 : vector<2x256x1xf32> to vector<2x256x256xf32>
    %9 = vector.broadcast %7 : vector<1x1x256xf32> to vector<2x256x256xf32>
    %10 = arith.cmpf oge, %8, %9 : vector<2x256x256xf32>
    %c0_6 = arith.constant 0 : index
    %c0_7 = arith.constant 0 : index
    %11 = vector.load %arg6[%c0_6, %c0_7] : memref<2x256xf32, #tpu.memory_space<vmem>>, vector<2x256xf32>
    %cst = arith.constant 1.000000e+00 : f32
    %cst_8 = arith.constant 0.000000e+00 : f32
    %12 = vector.broadcast %cst : f32 to vector<2x256x256xf32>
    %13 = vector.broadcast %cst_8 : f32 to vector<2x256x256xf32>
    %14 = arith.select %10, %12, %13 : vector<2x256x256xi1>, vector<2x256x256xf32>
    %cst_9 = arith.constant dense<0.000000e+00> : vector<2x256xf32>
    %15 = vector.multi_reduction <add>, %14, %cst_9 [1] : vector<2x256x256xf32> to vector<2x256xf32>
    %16 = arith.addf %11, %15 : vector<2x256xf32>
    %c0_10 = arith.constant 0 : index
    %c0_11 = arith.constant 0 : index
    %17 = vector.load %arg6[%c0_10, %c0_11] : memref<2x256xf32, #tpu.memory_space<vmem>>, vector<2x256xf32>
    tpu.vector_store %arg6[%c0_10, %c0_11], %16 {strides = array<i32>} : memref<2x256xf32, #tpu.memory_space<vmem>>, vector<2x256xf32>,
    %18 = vector.shape_cast %5 : vector<2x256xf32> to vector<2x256x1xf32>
    %19 = vector.shape_cast %3 : vector<1x256xf32> to vector<1x1x256xf32>
    %20 = vector.broadcast %18 : vector<2x256x1xf32> to vector<2x256x256xf32>
    %21 = vector.broadcast %19 : vector<1x1x256xf32> to vector<2x256x256xf32>
    %22 = arith.cmpf oge, %20, %21 : vector<2x256x256xf32>
    %c0_12 = arith.constant 0 : index
    %c0_13 = arith.constant 0 : index
    %23 = vector.load %arg5[%c0_12, %c0_13] : memref<2x256xf32, #tpu.memory_space<vmem>>, vector<2x256xf32>
    %cst_14 = arith.constant 1.000000e+00 : f32
    %cst_15 = arith.constant 0.000000e+00 : f32
    %24 = vector.broadcast %cst_14 : f32 to vector<2x256x256xf32>
    %25 = vector.broadcast %cst_15 : f32 to vector<2x256x256xf32>
    %26 = arith.select %22, %24, %25 : vector<2x256x256xi1>, vector<2x256x256xf32>
    %cst_16 = arith.constant dense<0.000000e+00> : vector<2x256xf32>
    %27 = vector.multi_reduction <add>, %26, %cst_16 [1] : vector<2x256x256xf32> to vector<2x256xf32>
    %28 = arith.addf %23, %27 : vector<2x256xf32>
    %c0_17 = arith.constant 0 : index
    %c0_18 = arith.constant 0 : index
    %29 = vector.load %arg5[%c0_17, %c0_18] : memref<2x256xf32, #tpu.memory_space<vmem>>, vector<2x256xf32>
    tpu.vector_store %arg5[%c0_17, %c0_18], %28 {strides = array<i32>} : memref<2x256xf32, #tpu.memory_space<vmem>>, vector<2x256xf32>,
    return
  }
  func.func @transform_0(%arg0: i32, %arg1: i32) -> (i32, i32) {
    %c0_i32 = arith.constant 0 : i32
    %c0_i32_0 = arith.constant 0 : i32
    %c0_i32_1 = arith.constant 0 : i32
    return %c0_i32, %c0_i32_0 : i32, i32
  }
  func.func @transform_1(%arg0: i32, %arg1: i32) -> (i32, i32) {
    %c0_i32 = arith.constant 0 : i32
    return %arg0, %arg1 : i32, i32
  }
  func.func @transform_2(%arg0: i32, %arg1: i32) -> (i32, i32) {
    %c0_i32 = arith.constant 0 : i32
    return %arg0, %arg1 : i32, i32
  }
  func.func @transform_3(%arg0: i32, %arg1: i32) -> (i32, i32) {
    %c0_i32 = arith.constant 0 : i32
    %c0_i32_0 = arith.constant 0 : i32
    return %arg0, %c0_i32 : i32, i32
  }
  func.func @transform_4(%arg0: i32, %arg1: i32) -> (i32, i32) {
    %c0_i32 = arith.constant 0 : i32
    %c0_i32_0 = arith.constant 0 : i32
    return %arg0, %c0_i32 : i32, i32
  }
}

</mosaic_0001>

<bundles_post_ra>
// kernel: tpu_custom_call.1
= control target key start
LH: loop header
LB: loop body
LE: loop exit
PB: predicated region body
PF: predicated region fallthrough
CT: control target
= control target key end

     0   :  { %10 = vsyncpa [#allocation3], 0  ;;  %s2460_s0 = inlined_call_operand.hbm [shape: f32[1,256], index: 0, kind: input, shape index: {}]   ;;  %s2461_s1 = inlined_call_operand.hbm [shape: f32[2,256], index: 1, kind: input, shape index: {}]   ;;  %s2462_s2 = inlined_call_operand.vmem [shape: f32[2,256], index: 2, kind: input, shape index: {}]   ;;  %s2463_s3 = inlined_call_operand.hbm [shape: f32[2,256], index: 3, kind: output, shape index: {0}]   ;;  %s2464_s4 = inlined_call_operand.hbm [shape: f32[2,256], index: 4, kind: output, shape index: {1}]  }
   0x1   :  { %11 = vsyncpa [#allocation6], 0 }
   0x2   :  { %12 = vsyncpa [#allocation4], 0 }
   0x3   :  { %13 = vsyncpa [#allocation9], 0  ;;  %s1630_s15 = smov [#allocation2]   ;;  %s1631_s17 = smov [#allocation5]  }
   0x4   :  { %s20_s16 = sshll.u32 %s1630_s15, 4  ;;  %s30_s18 = sshll.u32 %s1631_s17, 4  ;;  %s21_s16 = int_to_ptr.vmem [resolvable:$true] %s20_s16  ;;  %s31_s18 = int_to_ptr.vmem [resolvable:$true] %s30_s18 }
   0x5   :  { %s1534_s21 = scalar_lea.hbm %s2460_s0, 32 }
   0x6   :  { %p1535_p0 = scmp.ne.s32.totalorder %s2460_s0, %s1534_s21  ;;  %p1538_p1 = scmp.lt.u32.totalorder %s1534_s21, %s2460_s0 }
   0x8   :  { %p1540_p2 = pnand %p1538_p1, %p1535_p0 }
   0xa   :  { %1543 = shalt.err (!%p1540_p2)
}
   0xb   :  { %s1544_s26 = scalar_lea.vmem %s21_s16, 32  ;;  %p1549_p4 = scmp.lt.s32.totalorder %s21_s16, %s21_s16 }
   0xc   :  { %p1545_p3 = scmp.ne.s32.totalorder %s21_s16, %s1544_s26  ;;  %p1550_p5 = scmp.lt.s32.totalorder %s1544_s26, %s1544_s26 }
   0xe   :  { %p1551_p6 = por %p1550_p5, %p1549_p4 }
  0x10   :  { %p1552_p7 = pnand %p1551_p6, %p1545_p3 }
  0x12   :  { %1555 = shalt.err (!%p1552_p7)
}
  0x13   :  { %23 = dma.hbm_to_vmem [thread:$0]  %s2460_s0, 32, %s21_s16, [#allocation3]  }
  0x14   :  { %s1556_s5 = scalar_lea.hbm %s2461_s1, 64 }
  0x15   :  { %p1557_p8 = scmp.ne.s32.totalorder %s2461_s1, %s1556_s5  ;;  %p1560_p9 = scmp.lt.u32.totalorder %s1556_s5, %s2461_s1 }
  0x17   :  { %p1562_p10 = pnand %p1560_p9, %p1557_p8 }
  0x19   :  { %1565 = shalt.err (!%p1562_p10)
}
  0x1a   :  { %s1566_s10 = scalar_lea.vmem %s31_s18, 64  ;;  %p1571_p12 = scmp.lt.s32.totalorder %s31_s18, %s31_s18 }
  0x1b   :  { %p1567_p11 = scmp.ne.s32.totalorder %s31_s18, %s1566_s10  ;;  %p1572_p13 = scmp.lt.s32.totalorder %s1566_s10, %s1566_s10 }
  0x1d   :  { %p1573_p0 = por %p1572_p13, %p1571_p12 }
  0x1f   :  { %p1574_p1 = pnand %p1573_p0, %p1567_p11 }
  0x21   :  { %1577 = shalt.err (!%p1574_p1)
}
  0x22   :  { %33 = dma.hbm_to_vmem [thread:$0]  %s2461_s1, 64, %s31_s18, [#allocation6]  }
  0x23   :  { %1622 = dma.done.wait [#allocation3], 32  }
  0x24   :  { %1623 = vsyncadd [#allocation3], 4294967264 }
  0x25   :  { %1624 = dma.done.wait [#allocation6], 64  }
  0x26   :  { %1625 = vsyncadd [#allocation6], 4294967232  ;;  %v62_v0 = vlaneseq  ;;  %v1632_v1 = vmov 0.0   ;;  %v48_v14 = vld [vmem:[#allocation2] sm:$0x3] }
  0x27   :  { %46 = vst [vmem:[#allocation7] sm:$0xf] %v1632_v1  ;;  %47 = vst [vmem:[#allocation8] sm:$0xf] %v1632_v1 }
  0x28   :  { %v1687_v2 = vshrl.u32 %v62_v0, 7  ;;  %v1526_v5 = vld.sshfl [vmem:[#allocation5] sm:$0x33 pattern:$0x76325410] }
  0x29   :  { %v59_v7 = vcombine.high %v1526_v5, %v1526_v5  ;;  %v1708_v11 = vld.sshfl [vmem:[%s2462_s2] sm:$0x33 pattern:$0x76325410]  ;;  %s1634_s2 = smov [#allocation8]  }
  0x2a   :  { %v1690_v3 = vsub.s32 0, %v1687_v2  ;;  %v1693_v4 = vsub.s32 1, %v1687_v2  ;;  %s1512_s13 = sshll.u32 %s1634_s2, 4  ;;  %s1513_s13 = int_to_ptr.vmem [resolvable:$true] %s1512_s13 }
  0x2b   :  { %s1578_s14 = scalar_lea.vmem %s1513_s13, 64  ;;  %p1583_p3 = scmp.lt.s32.totalorder %s1513_s13, %s1513_s13 }
  0x2c   :  { %v65_v6 = vrot.slane %v1526_v5, %v1690_v3  ;;  %v199_v8 = vrot.slane %v1526_v5, %v1693_v4  ;;  %v1698_v9 = vrot.slane %v59_v7, %v1693_v4  ;;  %v132_v10 = vrot.slane %v59_v7, %v1690_v3  ;;  %p1579_p2 = scmp.ne.s32.totalorder %s1513_s13, %s1578_s14  ;;  %p1584_p4 = scmp.lt.s32.totalorder %s1578_s14, %s1578_s14 }
  0x2d   :  { %v1714_v12 = vrot.slane %v1708_v11, %v1693_v4  ;;  %v1720_v13 = vrot.slane %v1708_v11, %v1690_v3  ;;  %v1725_v15 = vrot.slane %v48_v14, %v1690_v3  ;;  %v1728_v16 = vrot.slane %v48_v14, %v1693_v4 }
  0x2e   :  { %75 = vbcast.lane.b32.xlu1 %v65_v6, 272  ;;  %67 = vbcast.lane.b32.xlu0 %v65_v6, 256  ;;  %p1585_p5 = por %p1584_p4, %p1583_p3 }
  0x30   :  { %p1586_p6 = pnand %p1585_p5, %p1579_p2 }
  0x32   :  { %79 = vbcast.lane.b32.xlu1 %v65_v6, 280  ;;  %71 = vbcast.lane.b32.xlu0 %v65_v6, 264 }
  0x36   :  { %87 = vbcast.lane.b32.xlu1 %v65_v6, 296  ;;  %83 = vbcast.lane.b32.xlu0 %v65_v6, 288 }
  0x3a   :  { %95 = vbcast.lane.b32.xlu1 %v65_v6, 312  ;;  %91 = vbcast.lane.b32.xlu0 %v65_v6, 304 }
  0x3e   :  { %103 = vbcast.lane.b32.xlu1 %v65_v6, 328  ;;  %99 = vbcast.lane.b32.xlu0 %v65_v6, 320 }
  0x42   :  { %111 = vbcast.lane.b32.xlu1 %v65_v6, 344  ;;  %107 = vbcast.lane.b32.xlu0 %v65_v6, 336 }
  0x46   :  { %119 = vbcast.lane.b32.xlu1 %v65_v6, 360  ;;  %115 = vbcast.lane.b32.xlu0 %v65_v6, 352 }
  0x4a   :  { %127 = vbcast.lane.b32.xlu1 %v65_v6, 376  ;;  %123 = vbcast.lane.b32.xlu0 %v65_v6, 368 }
  0x4e   :  { %138 = vbcast.lane.b32.xlu1 %v132_v10, 264  ;;  %134 = vbcast.lane.b32.xlu0 %v132_v10, 256 }
  0x52   :  { %146 = vbcast.lane.b32.xlu1 %v132_v10, 280  ;;  %142 = vbcast.lane.b32.xlu0 %v132_v10, 272 }
  0x56   :  { %154 = vbcast.lane.b32.xlu1 %v132_v10, 296  ;;  %150 = vbcast.lane.b32.xlu0 %v132_v10, 288 }
  0x5a   :  { %162 = vbcast.lane.b32.xlu1 %v132_v10, 312  ;;  %158 = vbcast.lane.b32.xlu0 %v132_v10, 304 }
  0x5e   :  { %170 = vbcast.lane.b32.xlu1 %v132_v10, 328  ;;  %166 = vbcast.lane.b32.xlu0 %v132_v10, 320 }
  0x62   :  { %178 = vbcast.lane.b32.xlu1 %v132_v10, 344  ;;  %174 = vbcast.lane.b32.xlu0 %v132_v10, 336 }
  0x66   :  { %186 = vbcast.lane.b32.xlu1 %v132_v10, 360  ;;  %182 = vbcast.lane.b32.xlu0 %v132_v10, 352 }
  0x6a   :  { %194 = vbcast.lane.b32.xlu1 %v132_v10, 376  ;;  %190 = vbcast.lane.b32.xlu0 %v132_v10, 368 }
  0x6e   :  { %205 = vbcast.lane.b32.xlu1 %v199_v8, 264  ;;  %201 = vbcast.lane.b32.xlu0 %v199_v8, 256 }
  0x72   :  { %213 = vbcast.lane.b32.xlu1 %v199_v8, 280  ;;  %209 = vbcast.lane.b32.xlu0 %v199_v8, 272 }
  0x76   :  { %221 = vbcast.lane.b32.xlu1 %v199_v8, 296  ;;  %217 = vbcast.lane.b32.xlu0 %v199_v8, 288 }
  0x7a   :  { %229 = vbcast.lane.b32.xlu1 %v199_v8, 312  ;;  %225 = vbcast.lane.b32.xlu0 %v199_v8, 304 }
  0x7e   :  { %237 = vbcast.lane.b32.xlu1 %v199_v8, 328  ;;  %233 = vbcast.lane.b32.xlu0 %v199_v8, 320 }
  0x82   :  { %245 = vbcast.lane.b32.xlu1 %v199_v8, 344  ;;  %241 = vbcast.lane.b32.xlu0 %v199_v8, 336 }
  0x86   :  { %253 = vbcast.lane.b32.xlu1 %v199_v8, 360  ;;  %249 = vbcast.lane.b32.xlu0 %v199_v8, 352 }
  0x8a   :  { %261 = vbcast.lane.b32.xlu1 %v199_v8, 376  ;;  %257 = vbcast.lane.b32.xlu0 %v199_v8, 368 }
  0x8e   :  { %272 = vbcast.lane.b32.xlu1 %v1698_v9, 264  ;;  %268 = vbcast.lane.b32.xlu0 %v1698_v9, 256 }
  0x92   :  { %280 = vbcast.lane.b32.xlu1 %v1698_v9, 280  ;;  %276 = vbcast.lane.b32.xlu0 %v1698_v9, 272 }
  0x96   :  { %288 = vbcast.lane.b32.xlu1 %v1698_v9, 296  ;;  %284 = vbcast.lane.b32.xlu0 %v1698_v9, 288 }
  0x9a   :  { %932 = vbcast.lane.b32.xlu1 %v1714_v12, 256  ;;  %292 = vbcast.lane.b32.xlu0 %v1698_v9, 304 }
  0x9e   :  { %798 = vbcast.lane.b32.xlu1 %v1720_v13, 256  ;;  %936 = vbcast.lane.b32.xlu0 %v1714_v12, 264 }
  0xa0   :  { %v76_v17 = vpop.permute.xlu1 %75  ;;  %v68_v18 = vpop.permute.xlu0 %67 }
  0xa1   :  { %vm341_vm0 = vcmp.ge.f32.partialorder %v68_v18, %v1725_v15  ;;  %vm342_vm1 = vcmp.ge.f32.partialorder %v68_v18, %v1728_v16  ;;  %vm345_vm2 = vcmp.ge.f32.partialorder %v76_v17, %v1725_v15  ;;  %vm346_vm3 = vcmp.ge.f32.partialorder %v76_v17, %v1728_v16 }
  0xa2   :  { %940 = vbcast.lane.b32.xlu1 %v1714_v12, 272  ;;  %802 = vbcast.lane.b32.xlu0 %v1720_v13, 264  ;;  %v470_v21 = vsel %vm341_vm0, 1.0, %v1632_v1  ;;  %v471_v22 = vsel %vm342_vm1, 1.0, %v1632_v1  ;;  %v474_v27 = vsel %vm345_vm2, 1.0, %v1632_v1  ;;  %v475_v28 = vsel %vm346_vm3, 1.0, %v1632_v1 }
  0xa4   :  { %v80_v19 = vpop.permute.xlu1 %79  ;;  %v72_v20 = vpop.permute.xlu0 %71 }
  0xa5   :  { %vm343_vm4 = vcmp.ge.f32.partialorder %v72_v20, %v1725_v15  ;;  %vm344_vm5 = vcmp.ge.f32.partialorder %v72_v20, %v1728_v16  ;;  %vm347_vm6 = vcmp.ge.f32.partialorder %v80_v19, %v1725_v15  ;;  %vm348_vm7 = vcmp.ge.f32.partialorder %v80_v19, %v1728_v16 }
  0xa6   :  { %v472_v23 = vsel %vm343_vm4, 1.0, %v1632_v1  ;;  %v473_v24 = vsel %vm344_vm5, 1.0, %v1632_v1  ;;  %944 = vbcast.lane.b32.xlu1 %v1714_v12, 280  ;;  %806 = vbcast.lane.b32.xlu0 %v1720_v13, 272  ;;  %v476_v33 = vsel %vm347_vm6, 1.0, %v1632_v1  ;;  %v477_v34 = vsel %vm348_vm7, 1.0, %v1632_v1 }
  0xa7   :  { %v598_v25 = vadd.f32 %v472_v23, %v470_v21  ;;  %v635_v26 = vadd.f32 %v473_v24, %v471_v22 }
  0xa8   :  { %v88_v29 = vpop.permute.xlu1 %87  ;;  %v84_v30 = vpop.permute.xlu0 %83 }
  0xa9   :  { %v599_v31 = vadd.f32 %v598_v25, %v474_v27  ;;  %v636_v32 = vadd.f32 %v635_v26, %v475_v28  ;;  %vm349_vm8 = vcmp.ge.f32.partialorder %v84_v30, %v1725_v15  ;;  %vm350_vm9 = vcmp.ge.f32.partialorder %v84_v30, %v1728_v16 }
  0xaa   :  { %948 = vbcast.lane.b32.xlu1 %v1714_v12, 288  ;;  %810 = vbcast.lane.b32.xlu0 %v1720_v13, 280  ;;  %vm351_vm10 = vcmp.ge.f32.partialorder %v88_v29, %v1725_v15  ;;  %vm352_vm11 = vcmp.ge.f32.partialorder %v88_v29, %v1728_v16  ;;  %v478_v37 = vsel %vm349_vm8, 1.0, %v1632_v1  ;;  %v479_v38 = vsel %vm350_vm9, 1.0, %v1632_v1 }
  0xab   :  { %v600_v35 = vadd.f32 %v599_v31, %v476_v33  ;;  %v637_v36 = vadd.f32 %v636_v32, %v477_v34  ;;  %v480_v43 = vsel %vm351_vm10, 1.0, %v1632_v1  ;;  %v481_v44 = vsel %vm352_vm11, 1.0, %v1632_v1 }
  0xac   :  { %v96_v39 = vpop.permute.xlu1 %95  ;;  %v92_v40 = vpop.permute.xlu0 %91 }
  0xad   :  { %v601_v41 = vadd.f32 %v600_v35, %v478_v37  ;;  %v638_v42 = vadd.f32 %v637_v36, %v479_v38  ;;  %vm353_vm12 = vcmp.ge.f32.partialorder %v92_v40, %v1725_v15  ;;  %vm354_vm13 = vcmp.ge.f32.partialorder %v92_v40, %v1728_v16 }
  0xae   :  { %952 = vbcast.lane.b32.xlu1 %v1714_v12, 296  ;;  %814 = vbcast.lane.b32.xlu0 %v1720_v13, 288  ;;  %vm355_vm14 = vcmp.ge.f32.partialorder %v96_v39, %v1725_v15  ;;  %vm356_vm15 = vcmp.ge.f32.partialorder %v96_v39, %v1728_v16  ;;  %v482_v47 = vsel %vm353_vm12, 1.0, %v1632_v1  ;;  %v483_v48 = vsel %vm354_vm13, 1.0, %v1632_v1 }
  0xaf   :  { %v602_v45 = vadd.f32 %v601_v41, %v480_v43  ;;  %v639_v46 = vadd.f32 %v638_v42, %v481_v44  ;;  %v484_v53 = vsel %vm355_vm14, 1.0, %v1632_v1  ;;  %v485_v54 = vsel %vm356_vm15, 1.0, %v1632_v1 }
  0xb0   :  { %v104_v49 = vpop.permute.xlu1 %103  ;;  %v100_v50 = vpop.permute.xlu0 %99 }
  0xb1   :  { %v603_v51 = vadd.f32 %v602_v45, %v482_v47  ;;  %v640_v52 = vadd.f32 %v639_v46, %v483_v48  ;;  %vm357_vm0 = vcmp.ge.f32.partialorder %v100_v50, %v1725_v15  ;;  %vm358_vm1 = vcmp.ge.f32.partialorder %v100_v50, %v1728_v16 }
  0xb2   :  { %956 = vbcast.lane.b32.xlu1 %v1714_v12, 304  ;;  %818 = vbcast.lane.b32.xlu0 %v1720_v13, 296  ;;  %vm359_vm2 = vcmp.ge.f32.partialorder %v104_v49, %v1725_v15  ;;  %vm360_vm3 = vcmp.ge.f32.partialorder %v104_v49, %v1728_v16  ;;  %v486_v57 = vsel %vm357_vm0, 1.0, %v1632_v1  ;;  %v487_v58 = vsel %vm358_vm1, 1.0, %v1632_v1 }
  0xb3   :  { %v604_v55 = vadd.f32 %v603_v51, %v484_v53  ;;  %v641_v56 = vadd.f32 %v640_v52, %v485_v54  ;;  %v488_v63 = vsel %vm359_vm2, 1.0, %v1632_v1  ;;  %v489_v0 = vsel %vm360_vm3, 1.0, %v1632_v1 }
  0xb4   :  { %v112_v59 = vpop.permute.xlu1 %111  ;;  %v108_v60 = vpop.permute.xlu0 %107 }
  0xb5   :  { %v605_v61 = vadd.f32 %v604_v55, %v486_v57  ;;  %v642_v62 = vadd.f32 %v641_v56, %v487_v58  ;;  %vm361_vm4 = vcmp.ge.f32.partialorder %v108_v60, %v1725_v15  ;;  %vm362_vm5 = vcmp.ge.f32.partialorder %v108_v60, %v1728_v16 }
  0xb6   :  { %960 = vbcast.lane.b32.xlu1 %v1714_v12, 312  ;;  %822 = vbcast.lane.b32.xlu0 %v1720_v13, 304  ;;  %vm363_vm6 = vcmp.ge.f32.partialorder %v112_v59, %v1725_v15  ;;  %vm364_vm7 = vcmp.ge.f32.partialorder %v112_v59, %v1728_v16  ;;  %v490_v7 = vsel %vm361_vm4, 1.0, %v1632_v1  ;;  %v491_v8 = vsel %vm362_vm5, 1.0, %v1632_v1 }
  0xb7   :  { %v606_v5 = vadd.f32 %v605_v61, %v488_v63  ;;  %v643_v6 = vadd.f32 %v642_v62, %v489_v0  ;;  %v492_v19 = vsel %vm363_vm6, 1.0, %v1632_v1  ;;  %v493_v20 = vsel %vm364_vm7, 1.0, %v1632_v1 }
  0xb8   :  { %v120_v10 = vpop.permute.xlu1 %119  ;;  %v116_v14 = vpop.permute.xlu0 %115 }
  0xb9   :  { %v607_v17 = vadd.f32 %v606_v5, %v490_v7  ;;  %v644_v18 = vadd.f32 %v643_v6, %v491_v8  ;;  %vm365_vm8 = vcmp.ge.f32.partialorder %v116_v14, %v1725_v15  ;;  %vm366_vm9 = vcmp.ge.f32.partialorder %v116_v14, %v1728_v16 }
  0xba   :  { %964 = vbcast.lane.b32.xlu1 %v1714_v12, 320  ;;  %826 = vbcast.lane.b32.xlu0 %v1720_v13, 312  ;;  %vm367_vm10 = vcmp.ge.f32.partialorder %v120_v10, %v1725_v15  ;;  %vm368_vm11 = vcmp.ge.f32.partialorder %v120_v10, %v1728_v16  ;;  %v494_v23 = vsel %vm365_vm8, 1.0, %v1632_v1  ;;  %v495_v24 = vsel %vm366_vm9, 1.0, %v1632_v1 }
  0xbb   :  { %v608_v21 = vadd.f32 %v607_v17, %v492_v19  ;;  %v645_v22 = vadd.f32 %v644_v18, %v493_v20  ;;  %v496_v29 = vsel %vm367_vm10, 1.0, %v1632_v1  ;;  %v497_v30 = vsel %vm368_vm11, 1.0, %v1632_v1 }
  0xbc   :  { %v128_v25 = vpop.permute.xlu1 %127  ;;  %v124_v26 = vpop.permute.xlu0 %123 }
  0xbd   :  { %v609_v27 = vadd.f32 %v608_v21, %v494_v23  ;;  %v646_v28 = vadd.f32 %v645_v22, %v495_v24  ;;  %vm369_vm12 = vcmp.ge.f32.partialorder %v124_v26, %v1725_v15  ;;  %vm370_vm13 = vcmp.ge.f32.partialorder %v124_v26, %v1728_v16 }
  0xbe   :  { %968 = vbcast.lane.b32.xlu1 %v1714_v12, 328  ;;  %830 = vbcast.lane.b32.xlu0 %v1720_v13, 320  ;;  %vm371_vm14 = vcmp.ge.f32.partialorder %v128_v25, %v1725_v15  ;;  %vm372_vm15 = vcmp.ge.f32.partialorder %v128_v25, %v1728_v16  ;;  %v498_v33 = vsel %vm369_vm12, 1.0, %v1632_v1  ;;  %v499_v34 = vsel %vm370_vm13, 1.0, %v1632_v1 }
  0xbf   :  { %v610_v31 = vadd.f32 %v609_v27, %v496_v29  ;;  %v647_v32 = vadd.f32 %v646_v28, %v497_v30  ;;  %v500_v39 = vsel %vm371_vm14, 1.0, %v1632_v1  ;;  %v501_v40 = vsel %vm372_vm15, 1.0, %v1632_v1 }
  0xc0   :  { %v139_v35 = vpop.permute.xlu1 %138  ;;  %v135_v36 = vpop.permute.xlu0 %134  ;;  %v790_v25 = vcombine.high %v1708_v11, %v1708_v11 }
  0xc1   :  { %v611_v37 = vadd.f32 %v610_v31, %v498_v33  ;;  %v648_v38 = vadd.f32 %v647_v32, %v499_v34  ;;  %vm373_vm0 = vcmp.ge.f32.partialorder %v135_v36, %v1725_v15  ;;  %vm374_vm1 = vcmp.ge.f32.partialorder %v135_v36, %v1728_v16 }
  0xc2   :  { %972 = vbcast.lane.b32.xlu1 %v1714_v12, 336  ;;  %834 = vbcast.lane.b32.xlu0 %v1720_v13, 328  ;;  %vm375_vm2 = vcmp.ge.f32.partialorder %v139_v35, %v1725_v15  ;;  %vm376_vm3 = vcmp.ge.f32.partialorder %v139_v35, %v1728_v16  ;;  %v502_v43 = vsel %vm373_vm0, 1.0, %v1632_v1  ;;  %v503_v44 = vsel %vm374_vm1, 1.0, %v1632_v1 }
  0xc3   :  { %v612_v41 = vadd.f32 %v611_v37, %v500_v39  ;;  %v649_v42 = vadd.f32 %v648_v38, %v501_v40  ;;  %v504_v49 = vsel %vm375_vm2, 1.0, %v1632_v1  ;;  %v505_v50 = vsel %vm376_vm3, 1.0, %v1632_v1 }
  0xc4   :  { %v147_v45 = vpop.permute.xlu1 %146  ;;  %v143_v46 = vpop.permute.xlu0 %142  ;;  %v1861_v35 = vrot.slane %v790_v25, %v1693_v4 }
  0xc5   :  { %v613_v47 = vadd.f32 %v612_v41, %v502_v43  ;;  %v650_v48 = vadd.f32 %v649_v42, %v503_v44  ;;  %vm377_vm4 = vcmp.ge.f32.partialorder %v143_v46, %v1725_v15  ;;  %vm378_vm5 = vcmp.ge.f32.partialorder %v143_v46, %v1728_v16 }
  0xc6   :  { %976 = vbcast.lane.b32.xlu1 %v1714_v12, 344  ;;  %838 = vbcast.lane.b32.xlu0 %v1720_v13, 336  ;;  %vm379_vm6 = vcmp.ge.f32.partialorder %v147_v45, %v1725_v15  ;;  %vm380_vm7 = vcmp.ge.f32.partialorder %v147_v45, %v1728_v16  ;;  %v506_v53 = vsel %vm377_vm4, 1.0, %v1632_v1  ;;  %v507_v54 = vsel %vm378_vm5, 1.0, %v1632_v1 }
  0xc7   :  { %v614_v51 = vadd.f32 %v613_v47, %v504_v49  ;;  %v651_v52 = vadd.f32 %v650_v48, %v505_v50  ;;  %v508_v59 = vsel %vm379_vm6, 1.0, %v1632_v1  ;;  %v509_v60 = vsel %vm380_vm7, 1.0, %v1632_v1 }
  0xc8   :  { %v155_v55 = vpop.permute.xlu1 %154  ;;  %v151_v56 = vpop.permute.xlu0 %150  ;;  %v1874_v45 = vrot.slane %v790_v25, %v1690_v3 }
  0xc9   :  { %v615_v57 = vadd.f32 %v614_v51, %v506_v53  ;;  %v652_v58 = vadd.f32 %v651_v52, %v507_v54  ;;  %vm381_vm8 = vcmp.ge.f32.partialorder %v151_v56, %v1725_v15  ;;  %vm382_vm9 = vcmp.ge.f32.partialorder %v151_v56, %v1728_v16 }
  0xca   :  { %980 = vbcast.lane.b32.xlu1 %v1714_v12, 352  ;;  %842 = vbcast.lane.b32.xlu0 %v1720_v13, 344  ;;  %vm383_vm10 = vcmp.ge.f32.partialorder %v155_v55, %v1725_v15  ;;  %vm384_vm11 = vcmp.ge.f32.partialorder %v155_v55, %v1728_v16  ;;  %v510_v63 = vsel %vm381_vm8, 1.0, %v1632_v1  ;;  %v511_v0 = vsel %vm382_vm9, 1.0, %v1632_v1 }
  0xcb   :  { %v616_v61 = vadd.f32 %v615_v57, %v508_v59  ;;  %v653_v62 = vadd.f32 %v652_v58, %v509_v60  ;;  %v512_v10 = vsel %vm383_vm10, 1.0, %v1632_v1  ;;  %v513_v14 = vsel %vm384_vm11, 1.0, %v1632_v1 }
  0xcc   :  { %v163_v5 = vpop.permute.xlu1 %162  ;;  %v159_v6 = vpop.permute.xlu0 %158 }
  0xcd   :  { %v617_v7 = vadd.f32 %v616_v61, %v510_v63  ;;  %v654_v8 = vadd.f32 %v653_v62, %v511_v0  ;;  %vm385_vm12 = vcmp.ge.f32.partialorder %v159_v6, %v1725_v15  ;;  %vm386_vm13 = vcmp.ge.f32.partialorder %v159_v6, %v1728_v16 }
  0xce   :  { %984 = vbcast.lane.b32.xlu1 %v1714_v12, 360  ;;  %846 = vbcast.lane.b32.xlu0 %v1720_v13, 352  ;;  %vm387_vm14 = vcmp.ge.f32.partialorder %v163_v5, %v1725_v15  ;;  %vm388_vm15 = vcmp.ge.f32.partialorder %v163_v5, %v1728_v16  ;;  %v514_v19 = vsel %vm385_vm12, 1.0, %v1632_v1  ;;  %v515_v20 = vsel %vm386_vm13, 1.0, %v1632_v1 }
  0xcf   :  { %v618_v17 = vadd.f32 %v617_v7, %v512_v10  ;;  %v655_v18 = vadd.f32 %v654_v8, %v513_v14  ;;  %v516_v26 = vsel %vm387_vm14, 1.0, %v1632_v1  ;;  %v517_v27 = vsel %vm388_vm15, 1.0, %v1632_v1 }
  0xd0   :  { %v171_v21 = vpop.permute.xlu1 %170  ;;  %v167_v22 = vpop.permute.xlu0 %166 }
  0xd1   :  { %v619_v23 = vadd.f32 %v618_v17, %v514_v19  ;;  %v656_v24 = vadd.f32 %v655_v18, %v515_v20  ;;  %vm389_vm0 = vcmp.ge.f32.partialorder %v167_v22, %v1725_v15  ;;  %vm390_vm1 = vcmp.ge.f32.partialorder %v167_v22, %v1728_v16 }
  0xd2   :  { %988 = vbcast.lane.b32.xlu1 %v1714_v12, 368  ;;  %850 = vbcast.lane.b32.xlu0 %v1720_v13, 360  ;;  %vm391_vm2 = vcmp.ge.f32.partialorder %v171_v21, %v1725_v15  ;;  %vm392_vm3 = vcmp.ge.f32.partialorder %v171_v21, %v1728_v16  ;;  %v518_v11 = vsel %vm389_vm0, 1.0, %v1632_v1  ;;  %v519_v30 = vsel %vm390_vm1, 1.0, %v1632_v1 }
  0xd3   :  { %v620_v28 = vadd.f32 %v619_v23, %v516_v26  ;;  %v657_v29 = vadd.f32 %v656_v24, %v517_v27  ;;  %v520_v36 = vsel %vm391_vm2, 1.0, %v1632_v1  ;;  %v521_v37 = vsel %vm392_vm3, 1.0, %v1632_v1 }
  0xd4   :  { %v179_v31 = vpop.permute.xlu1 %178  ;;  %v175_v32 = vpop.permute.xlu0 %174  ;;  %v1633_v17 = vmov 1983009808  }
  0xd5   :  { %v621_v33 = vadd.f32 %v620_v28, %v518_v11  ;;  %v658_v34 = vadd.f32 %v657_v29, %v519_v30  ;;  %vm393_vm4 = vcmp.ge.f32.partialorder %v175_v32, %v1725_v15  ;;  %vm394_vm5 = vcmp.ge.f32.partialorder %v175_v32, %v1728_v16 }
  0xd6   :  { %992 = vbcast.lane.b32.xlu1 %v1714_v12, 376  ;;  %854 = vbcast.lane.b32.xlu0 %v1720_v13, 368  ;;  %vm395_vm6 = vcmp.ge.f32.partialorder %v179_v31, %v1725_v15  ;;  %vm396_vm7 = vcmp.ge.f32.partialorder %v179_v31, %v1728_v16  ;;  %v522_v4 = vsel %vm393_vm4, 1.0, %v1632_v1  ;;  %v523_v40 = vsel %vm394_vm5, 1.0, %v1632_v1 }
  0xd7   :  { %v622_v38 = vadd.f32 %v621_v33, %v520_v36  ;;  %v659_v39 = vadd.f32 %v658_v34, %v521_v37  ;;  %v524_v12 = vsel %vm395_vm6, 1.0, %v1632_v1  ;;  %v525_v46 = vsel %vm396_vm7, 1.0, %v1632_v1 }
  0xd8   :  { %v187_v41 = vpop.permute.xlu1 %186  ;;  %v183_v42 = vpop.permute.xlu0 %182  ;;  %v752_v18 = vunpack.c.l.s4 %v1633_v17 }
  0xd9   :  { %v623_v43 = vadd.f32 %v622_v38, %v522_v4  ;;  %v660_v44 = vadd.f32 %v659_v39, %v523_v40  ;;  %vm397_vm8 = vcmp.ge.f32.partialorder %v183_v42, %v1725_v15  ;;  %vm398_vm9 = vcmp.ge.f32.partialorder %v183_v42, %v1728_v16 }
  0xda   :  { %999 = vbcast.lane.b32.xlu1 %v1861_v35, 256  ;;  %858 = vbcast.lane.b32.xlu0 %v1720_v13, 376  ;;  %vm399_vm10 = vcmp.ge.f32.partialorder %v187_v41, %v1725_v15  ;;  %vm400_vm11 = vcmp.ge.f32.partialorder %v187_v41, %v1728_v16  ;;  %v526_v3 = vsel %vm397_vm8, 1.0, %v1632_v1  ;;  %v527_v49 = vsel %vm398_vm9, 1.0, %v1632_v1 }
  0xdb   :  { %v624_v47 = vadd.f32 %v623_v43, %v524_v12  ;;  %v661_v48 = vadd.f32 %v660_v44, %v525_v46  ;;  %v528_v13 = vsel %vm399_vm10, 1.0, %v1632_v1  ;;  %v529_v54 = vsel %vm400_vm11, 1.0, %v1632_v1 }
  0xdc   :  { %v195_v50 = vpop.permute.xlu1 %194  ;;  %v191_v51 = vpop.permute.xlu0 %190  ;;  %v753_v29 = vunpack.c.0.s8 %v752_v18 }
  0xdd   :  { %v625_v52 = vadd.f32 %v624_v47, %v526_v3  ;;  %v662_v53 = vadd.f32 %v661_v48, %v527_v49  ;;  %vm403_vm12 = vcmp.ge.f32.partialorder %v195_v50, %v1725_v15  ;;  %vm404_vm13 = vcmp.ge.f32.partialorder %v195_v50, %v1728_v16 }
  0xde   :  { %vm401_vm14 = vcmp.ge.f32.partialorder %v191_v51, %v1725_v15  ;;  %vm402_vm15 = vcmp.ge.f32.partialorder %v191_v51, %v1728_v16  ;;  %1003 = vbcast.lane.b32.xlu1 %v1861_v35, 264  ;;  %865 = vbcast.lane.b32.xlu0 %v1874_v45, 256  ;;  %v532_v57 = vsel %vm403_vm12, 1.0, %v1632_v1  ;;  %v533_v58 = vsel %vm404_vm13, 1.0, %v1632_v1 }
  0xdf   :  { %v626_v55 = vadd.f32 %v625_v52, %v528_v13  ;;  %v663_v56 = vadd.f32 %v662_v53, %v529_v54  ;;  %v530_v59 = vsel %vm401_vm14, 1.0, %v1632_v1  ;;  %v531_v60 = vsel %vm402_vm15, 1.0, %v1632_v1 }
  0xe0   :  { %v206_v61 = vpop.permute.xlu1 %205  ;;  %v202_v62 = vpop.permute.xlu0 %201  ;;  %v1929_v41 = vsub.s32 %v753_v29, %v1687_v2 }
  0xe1   :  { %v627_v63 = vadd.f32 %v626_v55, %v530_v59  ;;  %v664_v0 = vadd.f32 %v663_v56, %v531_v60  ;;  %vm407_vm0 = vcmp.ge.f32.partialorder %v206_v61, %v1725_v15  ;;  %vm408_vm1 = vcmp.ge.f32.partialorder %v206_v61, %v1728_v16 }
  0xe2   :  { %v536_v5 = vsel %vm407_vm0, 1.0, %v1632_v1  ;;  %v537_v6 = vsel %vm408_vm1, 1.0, %v1632_v1  ;;  %vm405_vm2 = vcmp.ge.f32.partialorder %v202_v62, %v1725_v15  ;;  %vm406_vm3 = vcmp.ge.f32.partialorder %v202_v62, %v1728_v16  ;;  %1007 = vbcast.lane.b32.xlu1 %v1861_v35, 272  ;;  %869 = vbcast.lane.b32.xlu0 %v1874_v45, 264 }
  0xe3   :  { %v628_v7 = vadd.f32 %v627_v63, %v532_v57  ;;  %v665_v8 = vadd.f32 %v664_v0, %v533_v58  ;;  %v534_v10 = vsel %vm405_vm2, 1.0, %v1632_v1  ;;  %v535_v14 = vsel %vm406_vm3, 1.0, %v1632_v1 }
  0xe4   :  { %v672_v19 = vadd.f32 %v536_v5, %v534_v10  ;;  %v709_v20 = vadd.f32 %v537_v6, %v535_v14  ;;  %v214_v21 = vpop.permute.xlu1 %213  ;;  %v210_v22 = vpop.permute.xlu0 %209 }
  0xe5   :  { %v629_v23 = vrot.slane %v628_v7, 4  ;;  %v666_v24 = vrot.slane %v665_v8, 4  ;;  %vm411_vm4 = vcmp.ge.f32.partialorder %v214_v21, %v1725_v15  ;;  %vm412_vm5 = vcmp.ge.f32.partialorder %v214_v21, %v1728_v16 }
  0xe6   :  { %vm409_vm6 = vcmp.ge.f32.partialorder %v210_v22, %v1725_v15  ;;  %vm410_vm7 = vcmp.ge.f32.partialorder %v210_v22, %v1728_v16  ;;  %1011 = vbcast.lane.b32.xlu1 %v1861_v35, 280  ;;  %873 = vbcast.lane.b32.xlu0 %v1874_v45, 272  ;;  %v540_v11 = vsel %vm411_vm4, 1.0, %v1632_v1  ;;  %v541_v37 = vsel %vm412_vm5, 1.0, %v1632_v1 }
  0xe7   :  { %v630_v25 = vadd.f32 %v629_v23, %v628_v7  ;;  %v667_v26 = vadd.f32 %v666_v24, %v665_v8  ;;  %v538_v27 = vsel %vm409_vm6, 1.0, %v1632_v1  ;;  %v539_v28 = vsel %vm410_vm7, 1.0, %v1632_v1 }
  0xe8   :  { %v673_v30 = vadd.f32 %v672_v19, %v538_v27  ;;  %v710_v31 = vadd.f32 %v709_v20, %v539_v28  ;;  %v222_v32 = vpop.permute.xlu1 %221  ;;  %v218_v33 = vpop.permute.xlu0 %217 }
  0xe9   :  { %v631_v34 = vrot.slane %v630_v25, 2  ;;  %v668_v36 = vrot.slane %v667_v26, 2  ;;  %vm415_vm8 = vcmp.ge.f32.partialorder %v222_v32, %v1725_v15  ;;  %vm416_vm9 = vcmp.ge.f32.partialorder %v222_v32, %v1728_v16 }
  0xea   :  { %vm413_vm10 = vcmp.ge.f32.partialorder %v218_v33, %v1725_v15  ;;  %vm414_vm11 = vcmp.ge.f32.partialorder %v218_v33, %v1728_v16  ;;  %1015 = vbcast.lane.b32.xlu1 %v1861_v35, 288  ;;  %877 = vbcast.lane.b32.xlu0 %v1874_v45, 280  ;;  %v544_v42 = vsel %vm415_vm8, 1.0, %v1632_v1  ;;  %v674_v43 = vadd.f32 %v673_v30, %v540_v11 }
  0xeb   :  { %v632_v38 = vadd.f32 %v631_v34, %v630_v25  ;;  %v669_v39 = vadd.f32 %v668_v36, %v667_v26  ;;  %v542_v4 = vsel %vm413_vm10, 1.0, %v1632_v1  ;;  %v543_v40 = vsel %vm414_vm11, 1.0, %v1632_v1 }
  0xec   :  { %v711_v44 = vadd.f32 %v710_v31, %v541_v37  ;;  %v230_v12 = vpop.permute.xlu1 %229  ;;  %v226_v46 = vpop.permute.xlu0 %225  ;;  %v545_v3 = vsel %vm416_vm9, 1.0, %v1632_v1  ;;  %v675_v49 = vadd.f32 %v674_v43, %v542_v4 }
  0xed   :  { %v633_v47 = vrot.slane %v632_v38, 1  ;;  %v670_v48 = vrot.slane %v669_v39, 1  ;;  %vm419_vm12 = vcmp.ge.f32.partialorder %v230_v12, %v1725_v15  ;;  %vm420_vm13 = vcmp.ge.f32.partialorder %v230_v12, %v1728_v16 }
  0xee   :  { %v712_v50 = vadd.f32 %v711_v44, %v543_v40  ;;  %v548_v2 = vsel %vm419_vm12, 1.0, %v1632_v1  ;;  %1019 = vbcast.lane.b32.xlu1 %v1861_v35, 296  ;;  %881 = vbcast.lane.b32.xlu0 %v1874_v45, 288  ;;  %vm417_vm14 = vcmp.ge.f32.partialorder %v226_v46, %v1725_v15  ;;  %vm418_vm15 = vcmp.ge.f32.partialorder %v226_v46, %v1728_v16 }
  0xef   :  { %v634_v51 = vadd.f32 %v633_v47, %v632_v38  ;;  %v671_v52 = vadd.f32 %v670_v48, %v669_v39  ;;  %v546_v53 = vsel %vm417_vm14, 1.0, %v1632_v1  ;;  %v547_v13 = vsel %vm418_vm15, 1.0, %v1632_v1 }
  0xf0   :  { %v676_v54 = vadd.f32 %v675_v49, %v544_v42  ;;  %v713_v55 = vadd.f32 %v712_v50, %v545_v3  ;;  %v238_v56 = vpop.permute.xlu1 %237  ;;  %v234_v57 = vpop.permute.xlu0 %233  ;;  %v549_v59 = vsel %vm420_vm13, 1.0, %v1632_v1 }
  0xf1   :  { %v750_v58 = vcombine.low %v634_v51, %v671_v52  ;;  %vm423_vm0 = vcmp.ge.f32.partialorder %v238_v56, %v1725_v15  ;;  %vm421_vm1 = vcmp.ge.f32.partialorder %v234_v57, %v1725_v15  ;;  %vm424_vm2 = vcmp.ge.f32.partialorder %v238_v56, %v1728_v16 }
  0xf2   :  { %v677_v60 = vadd.f32 %v676_v54, %v546_v53  ;;  %v714_v61 = vadd.f32 %v713_v55, %v547_v13  ;;  %1023 = vbcast.lane.b32.xlu1 %v1861_v35, 304  ;;  %885 = vbcast.lane.b32.xlu0 %v1874_v45, 296  ;;  %vm422_vm3 = vcmp.ge.f32.partialorder %v234_v57, %v1728_v16  ;;  %v550_v63 = vsel %vm421_vm1, 1.0, %v1632_v1 }
  0xf3   :  { %v1951_v62 = vrot.slane %v750_v58, %v1929_v41  ;;  %v552_v0 = vsel %vm423_vm0, 1.0, %v1632_v1  ;;  %v551_v5 = vsel %vm422_vm3, 1.0, %v1632_v1  ;;  %v553_v14 = vsel %vm424_vm2, 1.0, %v1632_v1 }
  0xf4   :  { %v678_v6 = vadd.f32 %v677_v60, %v548_v2  ;;  %v715_v7 = vadd.f32 %v714_v61, %v549_v59  ;;  %v246_v8 = vpop.permute.xlu1 %245  ;;  %v242_v10 = vpop.permute.xlu0 %241 }
  0xf5   :  { %vm427_vm4 = vcmp.ge.f32.partialorder %v246_v8, %v1725_v15  ;;  %vm425_vm5 = vcmp.ge.f32.partialorder %v242_v10, %v1725_v15  ;;  %vm426_vm6 = vcmp.ge.f32.partialorder %v242_v10, %v1728_v16  ;;  %vm428_vm7 = vcmp.ge.f32.partialorder %v246_v8, %v1728_v16 }
  0xf6   :  { %v679_v17 = vadd.f32 %v678_v6, %v550_v63  ;;  %v716_v18 = vadd.f32 %v715_v7, %v551_v5  ;;  %889 = vbcast.lane.b32.xlu1 %v1874_v45, 304  ;;  %296 = vbcast.lane.b32.xlu0 %v1698_v9, 312  ;;  %v554_v19 = vsel %vm425_vm5, 1.0, %v1632_v1  ;;  %v555_v20 = vsel %vm426_vm6, 1.0, %v1632_v1 }
  0xf7   :  { %v556_v21 = vsel %vm427_vm4, 1.0, %v1632_v1  ;;  %v557_v26 = vsel %vm428_vm7, 1.0, %v1632_v1 }
  0xf8   :  { %v680_v22 = vadd.f32 %v679_v17, %v552_v0  ;;  %v717_v23 = vadd.f32 %v716_v18, %v553_v14  ;;  %v254_v24 = vpop.permute.xlu1 %253  ;;  %v250_v25 = vpop.permute.xlu0 %249 }
  0xf9   :  { %vm431_vm8 = vcmp.ge.f32.partialorder %v254_v24, %v1725_v15  ;;  %vm429_vm9 = vcmp.ge.f32.partialorder %v250_v25, %v1725_v15  ;;  %vm430_vm10 = vcmp.ge.f32.partialorder %v250_v25, %v1728_v16  ;;  %vm432_vm11 = vcmp.ge.f32.partialorder %v254_v24, %v1728_v16 }
  0xfa   :  { %v681_v27 = vadd.f32 %v680_v22, %v554_v19  ;;  %v718_v28 = vadd.f32 %v717_v23, %v555_v20  ;;  %300 = vbcast.lane.b32.xlu1 %v1698_v9, 320  ;;  %1027 = vbcast.lane.b32.xlu0 %v1861_v35, 312  ;;  %v558_v29 = vsel %vm429_vm9, 1.0, %v1632_v1  ;;  %v559_v11 = vsel %vm430_vm10, 1.0, %v1632_v1 }
  0xfb   :  { %v560_v30 = vsel %vm431_vm8, 1.0, %v1632_v1  ;;  %v561_v36 = vsel %vm432_vm11, 1.0, %v1632_v1 }
  0xfc   :  { %v682_v31 = vadd.f32 %v681_v27, %v556_v21  ;;  %v719_v32 = vadd.f32 %v718_v28, %v557_v26  ;;  %v262_v33 = vpop.permute.xlu1 %261  ;;  %v258_v34 = vpop.permute.xlu0 %257 }
  0xfd   :  { %vm435_vm12 = vcmp.ge.f32.partialorder %v262_v33, %v1725_v15  ;;  %vm433_vm13 = vcmp.ge.f32.partialorder %v258_v34, %v1725_v15  ;;  %vm434_vm14 = vcmp.ge.f32.partialorder %v258_v34, %v1728_v16  ;;  %vm436_vm15 = vcmp.ge.f32.partialorder %v262_v33, %v1728_v16 }
  0xfe   :  { %v683_v37 = vadd.f32 %v682_v31, %v558_v29  ;;  %v720_v38 = vadd.f32 %v719_v32, %v559_v11  ;;  %1031 = vbcast.lane.b32.xlu1 %v1861_v35, 320  ;;  %893 = vbcast.lane.b32.xlu0 %v1874_v45, 312  ;;  %v562_v39 = vsel %vm433_vm13, 1.0, %v1632_v1  ;;  %v563_v4 = vsel %vm434_vm14, 1.0, %v1632_v1 }
  0xff   :  { %v564_v40 = vsel %vm435_vm12, 1.0, %v1632_v1  ;;  %v565_v46 = vsel %vm436_vm15, 1.0, %v1632_v1 }
 0x100   :  { %v684_v42 = vadd.f32 %v683_v37, %v560_v30  ;;  %v721_v43 = vadd.f32 %v720_v38, %v561_v36  ;;  %v273_v44 = vpop.permute.xlu1 %272  ;;  %v269_v12 = vpop.permute.xlu0 %268 }
 0x101   :  { %vm439_vm0 = vcmp.ge.f32.partialorder %v273_v44, %v1725_v15  ;;  %vm437_vm1 = vcmp.ge.f32.partialorder %v269_v12, %v1725_v15  ;;  %vm438_vm2 = vcmp.ge.f32.partialorder %v269_v12, %v1728_v16  ;;  %vm440_vm3 = vcmp.ge.f32.partialorder %v273_v44, %v1728_v16 }
 0x102   :  { %v685_v47 = vadd.f32 %v684_v42, %v562_v39  ;;  %v722_v48 = vadd.f32 %v721_v43, %v563_v4  ;;  %897 = vbcast.lane.b32.xlu1 %v1874_v45, 320  ;;  %304 = vbcast.lane.b32.xlu0 %v1698_v9, 328  ;;  %v566_v3 = vsel %vm437_vm1, 1.0, %v1632_v1  ;;  %v567_v49 = vsel %vm438_vm2, 1.0, %v1632_v1 }
 0x103   :  { %v568_v50 = vsel %vm439_vm0, 1.0, %v1632_v1  ;;  %v569_v13 = vsel %vm440_vm3, 1.0, %v1632_v1 }
 0x104   :  { %v686_v2 = vadd.f32 %v685_v47, %v564_v40  ;;  %v723_v51 = vadd.f32 %v722_v48, %v565_v46  ;;  %v281_v52 = vpop.permute.xlu1 %280  ;;  %v277_v53 = vpop.permute.xlu0 %276 }
 0x105   :  { %vm443_vm4 = vcmp.ge.f32.partialorder %v281_v52, %v1725_v15  ;;  %vm441_vm5 = vcmp.ge.f32.partialorder %v277_v53, %v1725_v15  ;;  %vm442_vm6 = vcmp.ge.f32.partialorder %v277_v53, %v1728_v16  ;;  %vm444_vm7 = vcmp.ge.f32.partialorder %v281_v52, %v1728_v16 }
 0x106   :  { %v687_v54 = vadd.f32 %v686_v2, %v566_v3  ;;  %v724_v55 = vadd.f32 %v723_v51, %v567_v49  ;;  %308 = vbcast.lane.b32.xlu1 %v1698_v9, 336  ;;  %1035 = vbcast.lane.b32.xlu0 %v1861_v35, 328  ;;  %v570_v56 = vsel %vm441_vm5, 1.0, %v1632_v1  ;;  %v571_v57 = vsel %vm442_vm6, 1.0, %v1632_v1 }
 0x107   :  { %v572_v58 = vsel %vm443_vm4, 1.0, %v1632_v1  ;;  %v573_v0 = vsel %vm444_vm7, 1.0, %v1632_v1 }
 0x108   :  { %v688_v59 = vadd.f32 %v687_v54, %v568_v50  ;;  %v725_v60 = vadd.f32 %v724_v55, %v569_v13  ;;  %v289_v61 = vpop.permute.xlu1 %288  ;;  %v285_v63 = vpop.permute.xlu0 %284 }
 0x109   :  { %vm447_vm8 = vcmp.ge.f32.partialorder %v289_v61, %v1725_v15  ;;  %vm445_vm9 = vcmp.ge.f32.partialorder %v285_v63, %v1725_v15  ;;  %vm446_vm10 = vcmp.ge.f32.partialorder %v285_v63, %v1728_v16  ;;  %vm448_vm11 = vcmp.ge.f32.partialorder %v289_v61, %v1728_v16 }
 0x10a   :  { %v689_v5 = vadd.f32 %v688_v59, %v570_v56  ;;  %v726_v6 = vadd.f32 %v725_v60, %v571_v57  ;;  %1039 = vbcast.lane.b32.xlu1 %v1861_v35, 336  ;;  %901 = vbcast.lane.b32.xlu0 %v1874_v45, 328  ;;  %v574_v7 = vsel %vm445_vm9, 1.0, %v1632_v1  ;;  %v575_v8 = vsel %vm446_vm10, 1.0, %v1632_v1 }
 0x10b   :  { %v576_v19 = vsel %vm447_vm8, 1.0, %v1632_v1  ;;  %v577_v20 = vsel %vm448_vm11, 1.0, %v1632_v1 }
 0x10c   :  { %v690_v10 = vadd.f32 %v689_v5, %v572_v58  ;;  %v727_v14 = vadd.f32 %v726_v6, %v573_v0  ;;  %v933_v17 = vpop.permute.xlu1 %932  ;;  %v293_v18 = vpop.permute.xlu0 %292 }
 0x10d   :  { %vm449_vm12 = vcmp.ge.f32.partialorder %v293_v18, %v1725_v15  ;;  %vm450_vm13 = vcmp.ge.f32.partialorder %v293_v18, %v1728_v16  ;;  %vm1125_vm14 = vcmp.ge.f32.partialorder %v933_v17, %v1725_v15  ;;  %vm1126_vm15 = vcmp.ge.f32.partialorder %v933_v17, %v1728_v16 }
 0x10e   :  { %v691_v21 = vadd.f32 %v690_v10, %v574_v7  ;;  %v728_v22 = vadd.f32 %v727_v14, %v575_v8  ;;  %905 = vbcast.lane.b32.xlu1 %v1874_v45, 336  ;;  %312 = vbcast.lane.b32.xlu0 %v1698_v9, 344  ;;  %v578_v23 = vsel %vm449_vm12, 1.0, %v1632_v1  ;;  %v579_v24 = vsel %vm450_vm13, 1.0, %v1632_v1 }
 0x10f   :  { %v1254_v30 = vsel %vm1125_vm14, 1.0, %v1632_v1  ;;  %v1255_v31 = vsel %vm1126_vm15, 1.0, %v1632_v1 }
 0x110   :  { %v692_v25 = vadd.f32 %v691_v21, %v576_v19  ;;  %v729_v26 = vadd.f32 %v728_v22, %v577_v20  ;;  %v799_v27 = vpop.permute.xlu1 %798  ;;  %v937_v28 = vpop.permute.xlu0 %936 }
 0x111   :  { %vm1061_vm0 = vcmp.ge.f32.partialorder %v799_v27, %v1725_v15  ;;  %vm1062_vm1 = vcmp.ge.f32.partialorder %v799_v27, %v1728_v16  ;;  %vm1127_vm2 = vcmp.ge.f32.partialorder %v937_v28, %v1725_v15  ;;  %vm1128_vm3 = vcmp.ge.f32.partialorder %v937_v28, %v1728_v16 }
 0x112   :  { %v2030_v29 = vadd.f32 %v692_v25, %v578_v23  ;;  %v2032_v11 = vadd.f32 %v729_v26, %v579_v24  ;;  %316 = vbcast.lane.b32.xlu1 %v1698_v9, 352  ;;  %1043 = vbcast.lane.b32.xlu0 %v1861_v35, 344  ;;  %v1256_v32 = vsel %vm1127_vm2, 1.0, %v1632_v1  ;;  %v1257_v33 = vsel %vm1128_vm3, 1.0, %v1632_v1 }
 0x113   :  { %v1190_v34 = vsel %vm1061_vm0, 1.0, %v1632_v1  ;;  %v1191_v36 = vsel %vm1062_vm1, 1.0, %v1632_v1  ;;  %v1392_v37 = vadd.f32 %v1256_v32, %v1254_v30  ;;  %v1429_v38 = vadd.f32 %v1257_v33, %v1255_v31 }
 0x114   :  { %v941_v39 = vpop.permute.xlu1 %940  ;;  %v803_v4 = vpop.permute.xlu0 %802 }
 0x115   :  { %vm1129_vm4 = vcmp.ge.f32.partialorder %v941_v39, %v1725_v15  ;;  %vm1130_vm5 = vcmp.ge.f32.partialorder %v941_v39, %v1728_v16  ;;  %vm1063_vm6 = vcmp.ge.f32.partialorder %v803_v4, %v1725_v15  ;;  %vm1064_vm7 = vcmp.ge.f32.partialorder %v803_v4, %v1728_v16 }
 0x116   :  { %v1258_v40 = vsel %vm1129_vm4, 1.0, %v1632_v1  ;;  %v1259_v42 = vsel %vm1130_vm5, 1.0, %v1632_v1  ;;  %v1192_v43 = vsel %vm1063_vm6, 1.0, %v1632_v1  ;;  %v1193_v44 = vsel %vm1064_vm7, 1.0, %v1632_v1  ;;  %1047 = vbcast.lane.b32.xlu1 %v1861_v35, 352  ;;  %909 = vbcast.lane.b32.xlu0 %v1874_v45, 344 }
 0x117   :  { %v1393_v12 = vadd.f32 %v1392_v37, %v1258_v40  ;;  %v1430_v46 = vadd.f32 %v1429_v38, %v1259_v42  ;;  %v1318_v47 = vadd.f32 %v1192_v43, %v1190_v34  ;;  %v1355_v48 = vadd.f32 %v1193_v44, %v1191_v36 }
 0x118   :  { %v945_v3 = vpop.permute.xlu1 %944  ;;  %v807_v49 = vpop.permute.xlu0 %806 }
 0x119   :  { %vm1131_vm8 = vcmp.ge.f32.partialorder %v945_v3, %v1725_v15  ;;  %vm1132_vm9 = vcmp.ge.f32.partialorder %v945_v3, %v1728_v16  ;;  %vm1065_vm10 = vcmp.ge.f32.partialorder %v807_v49, %v1725_v15  ;;  %vm1066_vm11 = vcmp.ge.f32.partialorder %v807_v49, %v1728_v16 }
 0x11a   :  { %v1260_v50 = vsel %vm1131_vm8, 1.0, %v1632_v1  ;;  %v1261_v2 = vsel %vm1132_vm9, 1.0, %v1632_v1  ;;  %v1194_v51 = vsel %vm1065_vm10, 1.0, %v1632_v1  ;;  %v1195_v52 = vsel %vm1066_vm11, 1.0, %v1632_v1  ;;  %913 = vbcast.lane.b32.xlu1 %v1874_v45, 352  ;;  %320 = vbcast.lane.b32.xlu0 %v1698_v9, 360 }
 0x11b   :  { %v1394_v53 = vadd.f32 %v1393_v12, %v1260_v50  ;;  %v1431_v13 = vadd.f32 %v1430_v46, %v1261_v2  ;;  %v1319_v54 = vadd.f32 %v1318_v47, %v1194_v51  ;;  %v1356_v55 = vadd.f32 %v1355_v48, %v1195_v52 }
 0x11c   :  { %v949_v56 = vpop.permute.xlu1 %948  ;;  %v811_v57 = vpop.permute.xlu0 %810 }
 0x11d   :  { %vm1133_vm12 = vcmp.ge.f32.partialorder %v949_v56, %v1725_v15  ;;  %vm1134_vm13 = vcmp.ge.f32.partialorder %v949_v56, %v1728_v16  ;;  %vm1067_vm14 = vcmp.ge.f32.partialorder %v811_v57, %v1725_v15  ;;  %vm1068_vm15 = vcmp.ge.f32.partialorder %v811_v57, %v1728_v16 }
 0x11e   :  { %v1262_v58 = vsel %vm1133_vm12, 1.0, %v1632_v1  ;;  %v1263_v59 = vsel %vm1134_vm13, 1.0, %v1632_v1  ;;  %v1196_v60 = vsel %vm1067_vm14, 1.0, %v1632_v1  ;;  %v1197_v61 = vsel %vm1068_vm15, 1.0, %v1632_v1  ;;  %324 = vbcast.lane.b32.xlu1 %v1698_v9, 368  ;;  %1051 = vbcast.lane.b32.xlu0 %v1861_v35, 360 }
 0x11f   :  { %v1395_v63 = vadd.f32 %v1394_v53, %v1262_v58  ;;  %v1432_v0 = vadd.f32 %v1431_v13, %v1263_v59  ;;  %v1320_v5 = vadd.f32 %v1319_v54, %v1196_v60  ;;  %v1357_v6 = vadd.f32 %v1356_v55, %v1197_v61 }
 0x120   :  { %v953_v7 = vpop.permute.xlu1 %952  ;;  %v815_v8 = vpop.permute.xlu0 %814 }
 0x121   :  { %vm1135_vm0 = vcmp.ge.f32.partialorder %v953_v7, %v1725_v15  ;;  %vm1136_vm1 = vcmp.ge.f32.partialorder %v953_v7, %v1728_v16  ;;  %vm1069_vm2 = vcmp.ge.f32.partialorder %v815_v8, %v1725_v15  ;;  %vm1070_vm3 = vcmp.ge.f32.partialorder %v815_v8, %v1728_v16 }
 0x122   :  { %v1264_v10 = vsel %vm1135_vm0, 1.0, %v1632_v1  ;;  %v1265_v14 = vsel %vm1136_vm1, 1.0, %v1632_v1  ;;  %v1198_v17 = vsel %vm1069_vm2, 1.0, %v1632_v1  ;;  %v1199_v18 = vsel %vm1070_vm3, 1.0, %v1632_v1  ;;  %1055 = vbcast.lane.b32.xlu1 %v1861_v35, 368  ;;  %917 = vbcast.lane.b32.xlu0 %v1874_v45, 360 }
 0x123   :  { %v1396_v19 = vadd.f32 %v1395_v63, %v1264_v10  ;;  %v1433_v20 = vadd.f32 %v1432_v0, %v1265_v14  ;;  %v1321_v21 = vadd.f32 %v1320_v5, %v1198_v17  ;;  %v1358_v22 = vadd.f32 %v1357_v6, %v1199_v18 }
 0x124   :  { %v957_v23 = vpop.permute.xlu1 %956  ;;  %v819_v24 = vpop.permute.xlu0 %818 }
 0x125   :  { %vm1137_vm4 = vcmp.ge.f32.partialorder %v957_v23, %v1725_v15  ;;  %vm1138_vm5 = vcmp.ge.f32.partialorder %v957_v23, %v1728_v16  ;;  %vm1071_vm6 = vcmp.ge.f32.partialorder %v819_v24, %v1725_v15  ;;  %vm1072_vm7 = vcmp.ge.f32.partialorder %v819_v24, %v1728_v16 }
 0x126   :  { %v1266_v25 = vsel %vm1137_vm4, 1.0, %v1632_v1  ;;  %v1267_v26 = vsel %vm1138_vm5, 1.0, %v1632_v1  ;;  %v1200_v27 = vsel %vm1071_vm6, 1.0, %v1632_v1  ;;  %v1201_v28 = vsel %vm1072_vm7, 1.0, %v1632_v1  ;;  %921 = vbcast.lane.b32.xlu1 %v1874_v45, 368  ;;  %328 = vbcast.lane.b32.xlu0 %v1698_v9, 376 }
 0x127   :  { %v1397_v30 = vadd.f32 %v1396_v19, %v1266_v25  ;;  %v1434_v31 = vadd.f32 %v1433_v20, %v1267_v26  ;;  %v1322_v32 = vadd.f32 %v1321_v21, %v1200_v27  ;;  %v1359_v33 = vadd.f32 %v1358_v22, %v1201_v28 }
 0x128   :  { %v961_v34 = vpop.permute.xlu1 %960  ;;  %v823_v36 = vpop.permute.xlu0 %822 }
 0x129   :  { %vm1139_vm8 = vcmp.ge.f32.partialorder %v961_v34, %v1725_v15  ;;  %vm1140_vm9 = vcmp.ge.f32.partialorder %v961_v34, %v1728_v16  ;;  %vm1073_vm10 = vcmp.ge.f32.partialorder %v823_v36, %v1725_v15  ;;  %vm1074_vm11 = vcmp.ge.f32.partialorder %v823_v36, %v1728_v16 }
 0x12a   :  { %v1268_v37 = vsel %vm1139_vm8, 1.0, %v1632_v1  ;;  %v1269_v38 = vsel %vm1140_vm9, 1.0, %v1632_v1  ;;  %v1202_v9 = vsel %vm1073_vm10, 1.0, %v1632_v1  ;;  %v1203_v39 = vsel %vm1074_vm11, 1.0, %v1632_v1  ;;  %925 = vbcast.lane.b32.xlu1 %v1874_v45, 376  ;;  %1059 = vbcast.lane.b32.xlu0 %v1861_v35, 376 }
 0x12b   :  { %v1398_v4 = vadd.f32 %v1397_v30, %v1268_v37  ;;  %v1435_v40 = vadd.f32 %v1434_v31, %v1269_v38  ;;  %v1323_v42 = vadd.f32 %v1322_v32, %v1202_v9  ;;  %v1360_v43 = vadd.f32 %v1359_v33, %v1203_v39 }
 0x12c   :  { %v965_v44 = vpop.permute.xlu1 %964  ;;  %v827_v12 = vpop.permute.xlu0 %826 }
 0x12d   :  { %vm1141_vm12 = vcmp.ge.f32.partialorder %v965_v44, %v1725_v15  ;;  %vm1142_vm13 = vcmp.ge.f32.partialorder %v965_v44, %v1728_v16  ;;  %vm1075_vm14 = vcmp.ge.f32.partialorder %v827_v12, %v1725_v15  ;;  %vm1076_vm15 = vcmp.ge.f32.partialorder %v827_v12, %v1728_v16 }
 0x12e   :  { %v1270_v46 = vsel %vm1141_vm12, 1.0, %v1632_v1  ;;  %v1271_v45 = vsel %vm1142_vm13, 1.0, %v1632_v1  ;;  %v1204_v35 = vsel %vm1075_vm14, 1.0, %v1632_v1  ;;  %v1205_v47 = vsel %vm1076_vm15, 1.0, %v1632_v1 }
 0x12f   :  { %v1399_v48 = vadd.f32 %v1398_v4, %v1270_v46  ;;  %v1436_v3 = vadd.f32 %v1435_v40, %v1271_v45  ;;  %v1324_v49 = vadd.f32 %v1323_v42, %v1204_v35  ;;  %v1361_v50 = vadd.f32 %v1360_v43, %v1205_v47 }
 0x130   :  { %v969_v2 = vpop.permute.xlu1 %968  ;;  %v831_v51 = vpop.permute.xlu0 %830 }
 0x131   :  { %vm1077_vm0 = vcmp.ge.f32.partialorder %v831_v51, %v1725_v15  ;;  %vm1078_vm1 = vcmp.ge.f32.partialorder %v831_v51, %v1728_v16  ;;  %vm1143_vm4 = vcmp.ge.f32.partialorder %v969_v2, %v1725_v15  ;;  %vm1144_vm5 = vcmp.ge.f32.partialorder %v969_v2, %v1728_v16 }
 0x132   :  { %v1206_v52 = vsel %vm1077_vm0, 1.0, %v1632_v1  ;;  %v1207_v53 = vsel %vm1078_vm1, 1.0, %v1632_v1  ;;  %v1272_v20 = vsel %vm1143_vm4, 1.0, %v1632_v1  ;;  %v1273_v21 = vsel %vm1144_vm5, 1.0, %v1632_v1 }
 0x133   :  { %v1325_v13 = vadd.f32 %v1324_v49, %v1206_v52  ;;  %v1362_v54 = vadd.f32 %v1361_v50, %v1207_v53  ;;  %v1400_v26 = vadd.f32 %v1399_v48, %v1272_v20  ;;  %v1437_v27 = vadd.f32 %v1436_v3, %v1273_v21 }
 0x134   :  { %v973_v55 = vpop.permute.xlu1 %972  ;;  %v835_v56 = vpop.permute.xlu0 %834 }
 0x135   :  { %vm1079_vm2 = vcmp.ge.f32.partialorder %v835_v56, %v1725_v15  ;;  %vm1080_vm3 = vcmp.ge.f32.partialorder %v835_v56, %v1728_v16  ;;  %vm1145_vm6 = vcmp.ge.f32.partialorder %v973_v55, %v1725_v15  ;;  %vm1146_vm7 = vcmp.ge.f32.partialorder %v973_v55, %v1728_v16 }
 0x136   :  { %v1208_v57 = vsel %vm1079_vm2, 1.0, %v1632_v1  ;;  %v1209_v58 = vsel %vm1080_vm3, 1.0, %v1632_v1  ;;  %v1274_v24 = vsel %vm1145_vm6, 1.0, %v1632_v1  ;;  %v1275_v25 = vsel %vm1146_vm7, 1.0, %v1632_v1 }
 0x137   :  { %v1326_v59 = vadd.f32 %v1325_v13, %v1208_v57  ;;  %v1363_v60 = vadd.f32 %v1362_v54, %v1209_v58  ;;  %v1401_v31 = vadd.f32 %v1400_v26, %v1274_v24  ;;  %v1438_v32 = vadd.f32 %v1437_v27, %v1275_v25 }
 0x138   :  { %v977_v61 = vpop.permute.xlu1 %976  ;;  %v839_v63 = vpop.permute.xlu0 %838 }
 0x139   :  { %vm1147_vm8 = vcmp.ge.f32.partialorder %v977_v61, %v1725_v15  ;;  %vm1148_vm9 = vcmp.ge.f32.partialorder %v977_v61, %v1728_v16  ;;  %vm1081_vm10 = vcmp.ge.f32.partialorder %v839_v63, %v1725_v15  ;;  %vm1082_vm11 = vcmp.ge.f32.partialorder %v839_v63, %v1728_v16 }
 0x13a   :  { %v1276_v28 = vsel %vm1147_vm8, 1.0, %v1632_v1  ;;  %v1277_v30 = vsel %vm1148_vm9, 1.0, %v1632_v1  ;;  %v1210_v33 = vsel %vm1081_vm10, 1.0, %v1632_v1  ;;  %v1211_v34 = vsel %vm1082_vm11, 1.0, %v1632_v1 }
 0x13b   :  { %v1402_v39 = vadd.f32 %v1401_v31, %v1276_v28  ;;  %v1439_v4 = vadd.f32 %v1438_v32, %v1277_v30  ;;  %v1327_v40 = vadd.f32 %v1326_v59, %v1210_v33  ;;  %v1364_v42 = vadd.f32 %v1363_v60, %v1211_v34 }
 0x13c   :  { %v981_v0 = vpop.permute.xlu1 %980  ;;  %v843_v5 = vpop.permute.xlu0 %842 }
 0x13d   :  { %vm1149_vm12 = vcmp.ge.f32.partialorder %v981_v0, %v1725_v15  ;;  %vm1150_vm13 = vcmp.ge.f32.partialorder %v981_v0, %v1728_v16  ;;  %vm1083_vm14 = vcmp.ge.f32.partialorder %v843_v5, %v1725_v15  ;;  %vm1084_vm15 = vcmp.ge.f32.partialorder %v843_v5, %v1728_v16 }
 0x13e   :  { %v1278_v38 = vsel %vm1149_vm12, 1.0, %v1632_v1  ;;  %v1279_v9 = vsel %vm1150_vm13, 1.0, %v1632_v1  ;;  %v1212_v12 = vsel %vm1083_vm14, 1.0, %v1632_v1  ;;  %v1213_v46 = vsel %vm1084_vm15, 1.0, %v1632_v1 }
 0x13f   :  { %v1403_v43 = vadd.f32 %v1402_v39, %v1278_v38  ;;  %v1440_v44 = vadd.f32 %v1439_v4, %v1279_v9  ;;  %v1328_v50 = vadd.f32 %v1327_v40, %v1212_v12  ;;  %v1365_v2 = vadd.f32 %v1364_v42, %v1213_v46 }
 0x140   :  { %v985_v6 = vpop.permute.xlu1 %984  ;;  %v847_v7 = vpop.permute.xlu0 %846 }
 0x141   :  { %vm1151_vm0 = vcmp.ge.f32.partialorder %v985_v6, %v1725_v15  ;;  %vm1152_vm1 = vcmp.ge.f32.partialorder %v985_v6, %v1728_v16  ;;  %vm1085_vm2 = vcmp.ge.f32.partialorder %v847_v7, %v1725_v15  ;;  %vm1086_vm3 = vcmp.ge.f32.partialorder %v847_v7, %v1728_v16 }
 0x142   :  { %v1280_v47 = vsel %vm1151_vm0, 1.0, %v1632_v1  ;;  %v1281_v48 = vsel %vm1152_vm1, 1.0, %v1632_v1  ;;  %v1214_v3 = vsel %vm1085_vm2, 1.0, %v1632_v1  ;;  %v1215_v49 = vsel %vm1086_vm3, 1.0, %v1632_v1 }
 0x143   :  { %v1404_v51 = vadd.f32 %v1403_v43, %v1280_v47  ;;  %v1441_v52 = vadd.f32 %v1440_v44, %v1281_v48  ;;  %v1329_v56 = vadd.f32 %v1328_v50, %v1214_v3  ;;  %v1366_v57 = vadd.f32 %v1365_v2, %v1215_v49 }
 0x144   :  { %v2118_v8 = vpop.permute.xlu1 %988  ;;  %v2120_v10 = vpop.permute.xlu0 %850 }
 0x145   :  { %vm1153_vm4 = vcmp.ge.f32.partialorder %v2118_v8, %v1725_v15  ;;  %vm1154_vm5 = vcmp.ge.f32.partialorder %v2118_v8, %v1728_v16  ;;  %vm1087_vm6 = vcmp.ge.f32.partialorder %v2120_v10, %v1725_v15  ;;  %vm1088_vm7 = vcmp.ge.f32.partialorder %v2120_v10, %v1728_v16 }
 0x146   :  { %v1282_v53 = vsel %vm1153_vm4, 1.0, %v1632_v1  ;;  %v1283_v13 = vsel %vm1154_vm5, 1.0, %v1632_v1  ;;  %v1216_v58 = vsel %vm1087_vm6, 1.0, %v1632_v1  ;;  %v1217_v59 = vsel %vm1088_vm7, 1.0, %v1632_v1 }
 0x147   :  { %v1405_v63 = vadd.f32 %v1404_v51, %v1282_v53  ;;  %v1442_v0 = vadd.f32 %v1441_v52, %v1283_v13  ;;  %v1330_v5 = vadd.f32 %v1329_v56, %v1216_v58  ;;  %v1367_v6 = vadd.f32 %v1366_v57, %v1217_v59 }
 0x148   :  { %v2122_v14 = vpop.permute.xlu1 %992  ;;  %v2124_v17 = vpop.permute.xlu0 %854 }
 0x149   :  { %vm1155_vm8 = vcmp.ge.f32.partialorder %v2122_v14, %v1725_v15  ;;  %vm1156_vm9 = vcmp.ge.f32.partialorder %v2122_v14, %v1728_v16  ;;  %vm1089_vm10 = vcmp.ge.f32.partialorder %v2124_v17, %v1725_v15  ;;  %vm1090_vm11 = vcmp.ge.f32.partialorder %v2124_v17, %v1728_v16 }
 0x14a   :  { %v1284_v60 = vsel %vm1155_vm8, 1.0, %v1632_v1  ;;  %v1285_v61 = vsel %vm1156_vm9, 1.0, %v1632_v1  ;;  %v1218_v17 = vsel %vm1089_vm10, 1.0, %v1632_v1  ;;  %v1219_v20 = vsel %vm1090_vm11, 1.0, %v1632_v1 }
 0x14b   :  { %v1406_v10 = vadd.f32 %v1405_v63, %v1284_v60  ;;  %v1443_v14 = vadd.f32 %v1442_v0, %v1285_v61  ;;  %v1331_v25 = vadd.f32 %v1330_v5, %v1218_v17  ;;  %v1368_v26 = vadd.f32 %v1367_v6, %v1219_v20 }
 0x14c   :  { %v2128_v18 = vpop.permute.xlu1 %999  ;;  %v2130_v19 = vpop.permute.xlu0 %858 }
 0x14d   :  { %vm1157_vm12 = vcmp.ge.f32.partialorder %v2128_v18, %v1725_v15  ;;  %vm1158_vm13 = vcmp.ge.f32.partialorder %v2128_v18, %v1728_v16  ;;  %vm1091_vm14 = vcmp.ge.f32.partialorder %v2130_v19, %v1725_v15  ;;  %vm1092_vm15 = vcmp.ge.f32.partialorder %v2130_v19, %v1728_v16 }
 0x14e   :  { %v1286_v18 = vsel %vm1157_vm12, 1.0, %v1632_v1  ;;  %v1287_v21 = vsel %vm1158_vm13, 1.0, %v1632_v1  ;;  %v1220_v19 = vsel %vm1091_vm14, 1.0, %v1632_v1  ;;  %v1221_v24 = vsel %vm1092_vm15, 1.0, %v1632_v1 }
 0x14f   :  { %v1407_v28 = vadd.f32 %v1406_v10, %v1286_v18  ;;  %v1444_v30 = vadd.f32 %v1443_v14, %v1287_v21  ;;  %v1332_v33 = vadd.f32 %v1331_v25, %v1220_v19 }
 0x150   :  { %v2138_v22 = vpop.permute.xlu1 %1003  ;;  %v2140_v23 = vpop.permute.xlu0 %865 }
 0x151   :  { %vm1159_vm0 = vcmp.ge.f32.partialorder %v2138_v22, %v1725_v15  ;;  %vm1160_vm1 = vcmp.ge.f32.partialorder %v2138_v22, %v1728_v16  ;;  %vm1093_vm2 = vcmp.ge.f32.partialorder %v2140_v23, %v1725_v15  ;;  %vm1094_vm3 = vcmp.ge.f32.partialorder %v2140_v23, %v1728_v16 }
 0x152   :  { %v1288_v31 = vsel %vm1159_vm0, 1.0, %v1632_v1  ;;  %v1289_v32 = vsel %vm1160_vm1, 1.0, %v1632_v1  ;;  %v1369_v23 = vadd.f32 %v1368_v26, %v1221_v24  ;;  %v1222_v34 = vsel %vm1093_vm2, 1.0, %v1632_v1 }
 0x153   :  { %v1223_v38 = vsel %vm1094_vm3, 1.0, %v1632_v1  ;;  %v1408_v39 = vadd.f32 %v1407_v28, %v1288_v31  ;;  %v1445_v4 = vadd.f32 %v1444_v30, %v1289_v32  ;;  %v1333_v43 = vadd.f32 %v1332_v33, %v1222_v34 }
 0x154   :  { %v2152_v36 = vpop.permute.xlu1 %1007  ;;  %v2154_v37 = vpop.permute.xlu0 %869  ;;  %v1370_v44 = vadd.f32 %v1369_v23, %v1223_v38 }
 0x155   :  { %vm1161_vm4 = vcmp.ge.f32.partialorder %v2152_v36, %v1725_v15  ;;  %vm1162_vm5 = vcmp.ge.f32.partialorder %v2152_v36, %v1728_v16  ;;  %vm1095_vm6 = vcmp.ge.f32.partialorder %v2154_v37, %v1725_v15  ;;  %vm1096_vm7 = vcmp.ge.f32.partialorder %v2154_v37, %v1728_v16 }
 0x156   :  { %v1290_v9 = vsel %vm1161_vm4, 1.0, %v1632_v1  ;;  %v1291_v36 = vsel %vm1162_vm5, 1.0, %v1632_v1  ;;  %v1224_v46 = vsel %vm1095_vm6, 1.0, %v1632_v1  ;;  %v1225_v47 = vsel %vm1096_vm7, 1.0, %v1632_v1 }
 0x157   :  { %v1409_v37 = vadd.f32 %v1408_v39, %v1290_v9  ;;  %v1446_v12 = vadd.f32 %v1445_v4, %v1291_v36  ;;  %v1334_v2 = vadd.f32 %v1333_v43, %v1224_v46  ;;  %v1371_v51 = vadd.f32 %v1370_v44, %v1225_v47 }
 0x158   :  { %v2166_v45 = vpop.permute.xlu1 %1011  ;;  %v2168_v35 = vpop.permute.xlu0 %873 }
 0x159   :  { %vm1163_vm8 = vcmp.ge.f32.partialorder %v2166_v45, %v1725_v15  ;;  %vm1164_vm9 = vcmp.ge.f32.partialorder %v2166_v45, %v1728_v16  ;;  %vm1097_vm10 = vcmp.ge.f32.partialorder %v2168_v35, %v1725_v15  ;;  %vm1098_vm11 = vcmp.ge.f32.partialorder %v2168_v35, %v1728_v16 }
 0x15a   :  { %v1292_v45 = vsel %vm1163_vm8, 1.0, %v1632_v1  ;;  %v1293_v48 = vsel %vm1164_vm9, 1.0, %v1632_v1  ;;  %v1226_v3 = vsel %vm1097_vm10, 1.0, %v1632_v1  ;;  %v1227_v35 = vsel %vm1098_vm11, 1.0, %v1632_v1 }
 0x15b   :  { %v1410_v52 = vadd.f32 %v1409_v37, %v1292_v45  ;;  %v1447_v53 = vadd.f32 %v1446_v12, %v1293_v48  ;;  %v1335_v56 = vadd.f32 %v1334_v2, %v1226_v3  ;;  %v1372_v57 = vadd.f32 %v1371_v51, %v1227_v35 }
 0x15c   :  { %v2188_v54 = vpop.permute.xlu1 %1015  ;;  %v2190_v55 = vpop.permute.xlu0 %877 }
 0x15d   :  { %vm1165_vm12 = vcmp.ge.f32.partialorder %v2188_v54, %v1725_v15  ;;  %vm1166_vm13 = vcmp.ge.f32.partialorder %v2188_v54, %v1728_v16  ;;  %vm1099_vm14 = vcmp.ge.f32.partialorder %v2190_v55, %v1725_v15  ;;  %vm1100_vm15 = vcmp.ge.f32.partialorder %v2190_v55, %v1728_v16 }
 0x15e   :  { %v1294_v13 = vsel %vm1165_vm12, 1.0, %v1632_v1  ;;  %v1295_v54 = vsel %vm1166_vm13, 1.0, %v1632_v1  ;;  %v1228_v55 = vsel %vm1099_vm14, 1.0, %v1632_v1  ;;  %v1229_v58 = vsel %vm1100_vm15, 1.0, %v1632_v1 }
 0x15f   :  { %v1411_v0 = vadd.f32 %v1410_v52, %v1294_v13  ;;  %v1448_v5 = vadd.f32 %v1447_v53, %v1295_v54  ;;  %v1336_v6 = vadd.f32 %v1335_v56, %v1228_v55 }
 0x160   :  { %v2208_v7 = vpop.permute.xlu1 %1019  ;;  %v2210_v8 = vpop.permute.xlu0 %881 }
 0x161   :  { %vm1167_vm0 = vcmp.ge.f32.partialorder %v2208_v7, %v1725_v15  ;;  %vm1168_vm1 = vcmp.ge.f32.partialorder %v2208_v7, %v1728_v16  ;;  %vm1101_vm2 = vcmp.ge.f32.partialorder %v2210_v8, %v1725_v15  ;;  %vm1102_vm3 = vcmp.ge.f32.partialorder %v2210_v8, %v1728_v16 }
 0x162   :  { %v1296_v59 = vsel %vm1167_vm0, 1.0, %v1632_v1  ;;  %v1297_v60 = vsel %vm1168_vm1, 1.0, %v1632_v1  ;;  %v1373_v7 = vadd.f32 %v1372_v57, %v1229_v58  ;;  %v1230_v14 = vsel %vm1101_vm2, 1.0, %v1632_v1 }
 0x163   :  { %v1412_v10 = vadd.f32 %v1411_v0, %v1296_v59  ;;  %v1449_v8 = vadd.f32 %v1448_v5, %v1297_v60  ;;  %v1231_v17 = vsel %vm1102_vm3, 1.0, %v1632_v1  ;;  %v1337_v26 = vadd.f32 %v1336_v6, %v1230_v14 }
 0x164   :  { %v2230_v27 = vpop.permute.xlu1 %1023  ;;  %v2232_v22 = vpop.permute.xlu0 %885 }
 0x165   :  { %vm1169_vm4 = vcmp.ge.f32.partialorder %v2230_v27, %v1725_v15  ;;  %vm1170_vm5 = vcmp.ge.f32.partialorder %v2230_v27, %v1728_v16  ;;  %vm1103_vm6 = vcmp.ge.f32.partialorder %v2232_v22, %v1725_v15  ;;  %vm1104_vm7 = vcmp.ge.f32.partialorder %v2232_v22, %v1728_v16 }
 0x166   :  { %v1298_v20 = vsel %vm1169_vm4, 1.0, %v1632_v1  ;;  %v1299_v18 = vsel %vm1170_vm5, 1.0, %v1632_v1  ;;  %v1232_v24 = vsel %vm1103_vm6, 1.0, %v1632_v1  ;;  %v1233_v25 = vsel %vm1104_vm7, 1.0, %v1632_v1 }
 0x167   :  { %v1374_v27 = vadd.f32 %v1373_v7, %v1231_v17  ;;  %v1413_v22 = vadd.f32 %v1412_v10, %v1298_v20  ;;  %v1450_v28 = vadd.f32 %v1449_v8, %v1299_v18  ;;  %v1338_v32 = vadd.f32 %v1337_v26, %v1232_v24 }
 0x168   :  { %v2248_v40 = vpop.permute.xlu1 %889  ;;  %v2250_v42 = vpop.permute.xlu0 %296 }
 0x169   :  { %vm1105_vm8 = vcmp.ge.f32.partialorder %v2248_v40, %v1725_v15  ;;  %vm1106_vm9 = vcmp.ge.f32.partialorder %v2248_v40, %v1728_v16  ;;  %vm451_vm10 = vcmp.ge.f32.partialorder %v2250_v42, %v1725_v15  ;;  %vm452_vm11 = vcmp.ge.f32.partialorder %v2250_v42, %v1728_v16 }
 0x16a   :  { %v1234_v30 = vsel %vm1105_vm8, 1.0, %v1632_v1  ;;  %v1235_v31 = vsel %vm1106_vm9, 1.0, %v1632_v1  ;;  %v1375_v33 = vadd.f32 %v1374_v27, %v1233_v25  ;;  %v580_v23 = vsel %vm451_vm10, 1.0, %v1632_v1 }
 0x16b   :  { %v581_v34 = vsel %vm452_vm11, 1.0, %v1632_v1  ;;  %v1339_v4 = vadd.f32 %v1338_v32, %v1234_v30  ;;  %v694_v42 = vadd.f32 %v2030_v29, %v580_v23 }
 0x16c   :  { %v2270_v49 = vpop.permute.xlu1 %300  ;;  %v1028_v50 = vpop.permute.xlu0 %1027  ;;  %v1376_v40 = vadd.f32 %v1375_v33, %v1235_v31  ;;  %v731_v43 = vadd.f32 %v2032_v11, %v581_v34 }
 0x16d   :  { %vm1171_vm12 = vcmp.ge.f32.partialorder %v1028_v50, %v1725_v15  ;;  %vm1172_vm13 = vcmp.ge.f32.partialorder %v1028_v50, %v1728_v16  ;;  %vm453_vm14 = vcmp.ge.f32.partialorder %v2270_v49, %v1725_v15  ;;  %vm454_vm15 = vcmp.ge.f32.partialorder %v2270_v49, %v1728_v16 }
 0x16e   :  { %v1300_v36 = vsel %vm1171_vm12, 1.0, %v1632_v1  ;;  %v1301_v39 = vsel %vm1172_vm13, 1.0, %v1632_v1  ;;  %v582_v44 = vsel %vm453_vm14, 1.0, %v1632_v1  ;;  %v583_v37 = vsel %vm454_vm15, 1.0, %v1632_v1 }
 0x16f   :  { %v1414_v12 = vadd.f32 %v1413_v22, %v1300_v36  ;;  %v1451_v46 = vadd.f32 %v1450_v28, %v1301_v39  ;;  %v695_v35 = vadd.f32 %v694_v42, %v582_v44  ;;  %v732_v49 = vadd.f32 %v731_v43, %v583_v37 }
 0x170   :  { %v1032_v61 = vpop.permute.xlu1 %1031  ;;  %v894_v63 = vpop.permute.xlu0 %893 }
 0x171   :  { %vm1173_vm0 = vcmp.ge.f32.partialorder %v1032_v61, %v1725_v15  ;;  %vm1174_vm1 = vcmp.ge.f32.partialorder %v1032_v61, %v1728_v16  ;;  %vm1107_vm2 = vcmp.ge.f32.partialorder %v894_v63, %v1725_v15  ;;  %vm1108_vm3 = vcmp.ge.f32.partialorder %v894_v63, %v1728_v16 }
 0x172   :  { %v1302_v48 = vsel %vm1173_vm0, 1.0, %v1632_v1  ;;  %v1303_v3 = vsel %vm1174_vm1, 1.0, %v1632_v1  ;;  %v1236_v29 = vsel %vm1107_vm2, 1.0, %v1632_v1  ;;  %v1237_v11 = vsel %vm1108_vm3, 1.0, %v1632_v1 }
 0x173   :  { %v1415_v50 = vadd.f32 %v1414_v12, %v1302_v48  ;;  %v1452_v2 = vadd.f32 %v1451_v46, %v1303_v3  ;;  %v1340_v54 = vadd.f32 %v1339_v4, %v1236_v29  ;;  %v1377_v56 = vadd.f32 %v1376_v40, %v1237_v11 }
 0x174   :  { %v898_v21 = vpop.permute.xlu1 %897  ;;  %v305_v19 = vpop.permute.xlu0 %304 }
 0x175   :  { %vm1109_vm4 = vcmp.ge.f32.partialorder %v898_v21, %v1725_v15  ;;  %vm1110_vm5 = vcmp.ge.f32.partialorder %v898_v21, %v1728_v16  ;;  %vm455_vm6 = vcmp.ge.f32.partialorder %v305_v19, %v1725_v15  ;;  %vm456_vm7 = vcmp.ge.f32.partialorder %v305_v19, %v1728_v16 }
 0x176   :  { %v1238_v51 = vsel %vm1109_vm4, 1.0, %v1632_v1  ;;  %v1239_v52 = vsel %vm1110_vm5, 1.0, %v1632_v1  ;;  %v584_v57 = vsel %vm455_vm6, 1.0, %v1632_v1  ;;  %v585_v55 = vsel %vm456_vm7, 1.0, %v1632_v1 }
 0x177   :  { %v1341_v60 = vadd.f32 %v1340_v54, %v1238_v51  ;;  %v1378_v61 = vadd.f32 %v1377_v56, %v1239_v52  ;;  %v696_v63 = vadd.f32 %v695_v35, %v584_v57  ;;  %v733_v0 = vadd.f32 %v732_v49, %v585_v55 }
 0x178   :  { %v309_v38 = vpop.permute.xlu1 %308  ;;  %v1036_v9 = vpop.permute.xlu0 %1035 }
 0x179   :  { %vm1175_vm8 = vcmp.ge.f32.partialorder %v1036_v9, %v1725_v15  ;;  %vm1176_vm9 = vcmp.ge.f32.partialorder %v1036_v9, %v1728_v16  ;;  %vm457_vm10 = vcmp.ge.f32.partialorder %v309_v38, %v1725_v15  ;;  %vm458_vm11 = vcmp.ge.f32.partialorder %v309_v38, %v1728_v16 }
 0x17a   :  { %v1304_v58 = vsel %vm1175_vm8, 1.0, %v1632_v1  ;;  %v1305_v59 = vsel %vm1176_vm9, 1.0, %v1632_v1  ;;  %v586_v7 = vsel %vm457_vm10, 1.0, %v1632_v1  ;;  %v587_v10 = vsel %vm458_vm11, 1.0, %v1632_v1 }
 0x17b   :  { %v1416_v8 = vadd.f32 %v1415_v50, %v1304_v58  ;;  %v1453_v14 = vadd.f32 %v1452_v2, %v1305_v59  ;;  %v697_v19 = vadd.f32 %v696_v63, %v586_v7  ;;  %v734_v24 = vadd.f32 %v733_v0, %v587_v10 }
 0x17c   :  { %v1040_v47 = vpop.permute.xlu1 %1039  ;;  %v902_v45 = vpop.permute.xlu0 %901 }
 0x17d   :  { %vm1177_vm12 = vcmp.ge.f32.partialorder %v1040_v47, %v1725_v15  ;;  %vm1178_vm13 = vcmp.ge.f32.partialorder %v1040_v47, %v1728_v16  ;;  %vm1111_vm14 = vcmp.ge.f32.partialorder %v902_v45, %v1725_v15  ;;  %vm1112_vm15 = vcmp.ge.f32.partialorder %v902_v45, %v1728_v16 }
 0x17e   :  { %v1306_v17 = vsel %vm1177_vm12, 1.0, %v1632_v1  ;;  %v1307_v20 = vsel %vm1178_vm13, 1.0, %v1632_v1  ;;  %v1240_v18 = vsel %vm1111_vm14, 1.0, %v1632_v1  ;;  %v1241_v21 = vsel %vm1112_vm15, 1.0, %v1632_v1 }
 0x17f   :  { %v1417_v27 = vadd.f32 %v1416_v8, %v1306_v17  ;;  %v1454_v22 = vadd.f32 %v1453_v14, %v1307_v20  ;;  %v1342_v31 = vadd.f32 %v1341_v60, %v1240_v18  ;;  %v1379_v32 = vadd.f32 %v1378_v61, %v1241_v21 }
 0x180   :  { %v906_v53 = vpop.permute.xlu1 %905  ;;  %v313_v13 = vpop.permute.xlu0 %312 }
 0x181   :  { %vm1113_vm0 = vcmp.ge.f32.partialorder %v906_v53, %v1725_v15  ;;  %vm1114_vm1 = vcmp.ge.f32.partialorder %v906_v53, %v1728_v16  ;;  %vm459_vm2 = vcmp.ge.f32.partialorder %v313_v13, %v1725_v15  ;;  %vm460_vm3 = vcmp.ge.f32.partialorder %v313_v13, %v1728_v16 }
 0x182   :  { %v1242_v28 = vsel %vm1113_vm0, 1.0, %v1632_v1  ;;  %v1243_v30 = vsel %vm1114_vm1, 1.0, %v1632_v1  ;;  %v588_v33 = vsel %vm459_vm2, 1.0, %v1632_v1  ;;  %v589_v23 = vsel %vm460_vm3, 1.0, %v1632_v1 }
 0x183   :  { %v1343_v9 = vadd.f32 %v1342_v31, %v1242_v28  ;;  %v1380_v36 = vadd.f32 %v1379_v32, %v1243_v30  ;;  %v698_v40 = vadd.f32 %v697_v19, %v588_v33  ;;  %v735_v42 = vadd.f32 %v734_v24, %v589_v23 }
 0x184   :  { %v317_v5 = vpop.permute.xlu1 %316  ;;  %v1044_v6 = vpop.permute.xlu0 %1043 }
 0x185   :  { %vm1179_vm4 = vcmp.ge.f32.partialorder %v1044_v6, %v1725_v15  ;;  %vm1180_vm5 = vcmp.ge.f32.partialorder %v1044_v6, %v1728_v16  ;;  %vm461_vm6 = vcmp.ge.f32.partialorder %v317_v5, %v1725_v15  ;;  %vm462_vm7 = vcmp.ge.f32.partialorder %v317_v5, %v1728_v16 }
 0x186   :  { %v1308_v34 = vsel %vm1179_vm4, 1.0, %v1632_v1  ;;  %v1309_v38 = vsel %vm1180_vm5, 1.0, %v1632_v1  ;;  %v590_v43 = vsel %vm461_vm6, 1.0, %v1632_v1  ;;  %v591_v44 = vsel %vm462_vm7, 1.0, %v1632_v1 }
 0x187   :  { %v1418_v37 = vadd.f32 %v1417_v27, %v1308_v34  ;;  %v1455_v12 = vadd.f32 %v1454_v22, %v1309_v38  ;;  %v699_v11 = vadd.f32 %v698_v40, %v590_v43  ;;  %v736_v35 = vadd.f32 %v735_v42, %v591_v44 }
 0x188   :  { %v1048_v25 = vpop.permute.xlu1 %1047  ;;  %v910_v26 = vpop.permute.xlu0 %909 }
 0x189   :  { %vm1181_vm8 = vcmp.ge.f32.partialorder %v1048_v25, %v1725_v15  ;;  %vm1182_vm9 = vcmp.ge.f32.partialorder %v1048_v25, %v1728_v16  ;;  %vm1115_vm10 = vcmp.ge.f32.partialorder %v910_v26, %v1725_v15  ;;  %vm1116_vm11 = vcmp.ge.f32.partialorder %v910_v26, %v1728_v16 }
 0x18a   :  { %v1310_v46 = vsel %vm1181_vm8, 1.0, %v1632_v1  ;;  %v1311_v47 = vsel %vm1182_vm9, 1.0, %v1632_v1  ;;  %v1244_v45 = vsel %vm1115_vm10, 1.0, %v1632_v1  ;;  %v1245_v48 = vsel %vm1116_vm11, 1.0, %v1632_v1 }
 0x18b   :  { %v1419_v49 = vadd.f32 %v1418_v37, %v1310_v46  ;;  %v1456_v50 = vadd.f32 %v1455_v12, %v1311_v47  ;;  %v1344_v52 = vadd.f32 %v1343_v9, %v1244_v45  ;;  %v1381_v53 = vadd.f32 %v1380_v36, %v1245_v48 }
 0x18c   :  { %v914_v39 = vpop.permute.xlu1 %913  ;;  %v321_v4 = vpop.permute.xlu0 %320 }
 0x18d   :  { %vm463_vm12 = vcmp.ge.f32.partialorder %v321_v4, %v1725_v15  ;;  %vm464_vm13 = vcmp.ge.f32.partialorder %v321_v4, %v1728_v16  ;;  %vm1117_vm14 = vcmp.ge.f32.partialorder %v914_v39, %v1725_v15  ;;  %vm1118_vm15 = vcmp.ge.f32.partialorder %v914_v39, %v1728_v16 }
 0x18e   :  { %v592_v2 = vsel %vm463_vm12, 1.0, %v1632_v1  ;;  %v593_v51 = vsel %vm464_vm13, 1.0, %v1632_v1  ;;  %v1246_v13 = vsel %vm1117_vm14, 1.0, %v1632_v1  ;;  %v1247_v54 = vsel %vm1118_vm15, 1.0, %v1632_v1 }
 0x18f   :  { %v700_v59 = vadd.f32 %v699_v11, %v592_v2  ;;  %v737_v60 = vadd.f32 %v736_v35, %v593_v51  ;;  %v1345_v61 = vadd.f32 %v1344_v52, %v1246_v13  ;;  %v1382_v63 = vadd.f32 %v1381_v53, %v1247_v54 }
 0x190   :  { %v325_v3 = vpop.permute.xlu1 %324  ;;  %v1052_v29 = vpop.permute.xlu0 %1051 }
 0x191   :  { %vm465_vm0 = vcmp.ge.f32.partialorder %v325_v3, %v1725_v15  ;;  %vm466_vm1 = vcmp.ge.f32.partialorder %v325_v3, %v1728_v16  ;;  %vm1183_vm2 = vcmp.ge.f32.partialorder %v1052_v29, %v1725_v15  ;;  %vm1184_vm3 = vcmp.ge.f32.partialorder %v1052_v29, %v1728_v16 }
 0x192   :  { %v594_v56 = vsel %vm465_vm0, 1.0, %v1632_v1  ;;  %v595_v57 = vsel %vm466_vm1, 1.0, %v1632_v1  ;;  %v1312_v10 = vsel %vm1183_vm2, 1.0, %v1632_v1  ;;  %v1313_v8 = vsel %vm1184_vm3, 1.0, %v1632_v1 }
 0x193   :  { %v701_v6 = vadd.f32 %v700_v59, %v594_v56  ;;  %v738_v7 = vadd.f32 %v737_v60, %v595_v57  ;;  %v1420_v26 = vadd.f32 %v1419_v49, %v1312_v10  ;;  %v1457_v27 = vadd.f32 %v1456_v50, %v1313_v8 }
 0x194   :  { %v1056_v55 = vpop.permute.xlu1 %1055  ;;  %v918_v58 = vpop.permute.xlu0 %917  ;;  %vm771_vm0 = vcmask 1041409   ;;  %vm773_vm1 = vcmask 1043459   ;;  %vm775_vm2 = vcmask 1045509   ;;  %vm777_vm3 = vcmask 1047559  }
 0x195   :  { %vm1119_vm4 = vcmp.ge.f32.partialorder %v918_v58, %v1725_v15  ;;  %vm1120_vm5 = vcmp.ge.f32.partialorder %v918_v58, %v1728_v16  ;;  %vm1185_vm6 = vcmp.ge.f32.partialorder %v1056_v55, %v1725_v15  ;;  %vm1186_vm7 = vcmp.ge.f32.partialorder %v1056_v55, %v1728_v16 }
 0x196   :  { %v1248_v0 = vsel %vm1119_vm4, 1.0, %v1632_v1  ;;  %v1249_v5 = vsel %vm1120_vm5, 1.0, %v1632_v1  ;;  %v1314_v30 = vsel %vm1185_vm6, 1.0, %v1632_v1  ;;  %v1315_v31 = vsel %vm1186_vm7, 1.0, %v1632_v1 }
 0x197   :  { %v1346_v14 = vadd.f32 %v1345_v61, %v1248_v0  ;;  %v1383_v17 = vadd.f32 %v1382_v63, %v1249_v5  ;;  %v1421_v44 = vadd.f32 %v1420_v26, %v1314_v30  ;;  %v1458_v37 = vadd.f32 %v1457_v27, %v1315_v31  ;;  %v469_v27 = vld [vmem:[#allocation8] sm:$0xf] }
 0x198   :  { %v922_v20 = vpop.permute.xlu1 %921  ;;  %v329_v18 = vpop.permute.xlu0 %328 }
 0x199   :  { %vm1121_vm8 = vcmp.ge.f32.partialorder %v922_v20, %v1725_v15  ;;  %vm1122_vm9 = vcmp.ge.f32.partialorder %v922_v20, %v1728_v16  ;;  %vm467_vm10 = vcmp.ge.f32.partialorder %v329_v18, %v1725_v15  ;;  %vm468_vm11 = vcmp.ge.f32.partialorder %v329_v18, %v1728_v16 }
 0x19a   :  { %v1250_v21 = vsel %vm1121_vm8, 1.0, %v1632_v1  ;;  %v1251_v19 = vsel %vm1122_vm9, 1.0, %v1632_v1  ;;  %v596_v24 = vsel %vm467_vm10, 1.0, %v1632_v1  ;;  %v597_v25 = vsel %vm468_vm11, 1.0, %v1632_v1 }
 0x19b   :  { %v702_v22 = vadd.f32 %v701_v6, %v596_v24  ;;  %v739_v28 = vadd.f32 %v738_v7, %v597_v25  ;;  %v1347_v32 = vadd.f32 %v1346_v14, %v1250_v21  ;;  %v1384_v33 = vadd.f32 %v1383_v17, %v1251_v19 }
 0x19c   :  { %v926_v23 = vpop.permute.xlu1 %925  ;;  %v1060_v34 = vpop.permute.xlu0 %1059 }
 0x19d   :  { %v703_v38 = vrot.slane %v702_v22, 4  ;;  %v740_v9 = vrot.slane %v739_v28, 4  ;;  %vm1123_vm12 = vcmp.ge.f32.partialorder %v926_v23, %v1725_v15  ;;  %vm1124_vm13 = vcmp.ge.f32.partialorder %v926_v23, %v1728_v16 }
 0x19e   :  { %v1252_v36 = vsel %vm1123_vm12, 1.0, %v1632_v1  ;;  %v1253_v39 = vsel %vm1124_vm13, 1.0, %v1632_v1  ;;  %vm1187_vm14 = vcmp.ge.f32.partialorder %v1060_v34, %v1725_v15  ;;  %vm1188_vm15 = vcmp.ge.f32.partialorder %v1060_v34, %v1728_v16 }
 0x19f   :  { %v704_v4 = vadd.f32 %v703_v38, %v702_v22  ;;  %v741_v40 = vadd.f32 %v740_v9, %v739_v28  ;;  %v1348_v42 = vadd.f32 %v1347_v32, %v1252_v36  ;;  %v1385_v43 = vadd.f32 %v1384_v33, %v1253_v39 }
 0x1a0   :  { %v1316_v12 = vsel %vm1187_vm14, 1.0, %v1632_v1  ;;  %v1317_v46 = vsel %vm1188_vm15, 1.0, %v1632_v1 }
 0x1a1   :  { %v705_v47 = vrot.slane %v704_v4, 2  ;;  %v742_v45 = vrot.slane %v741_v40, 2  ;;  %v1349_v48 = vrot.slane %v1348_v42, 4  ;;  %v1386_v3 = vrot.slane %v1385_v43, 4 }
 0x1a2   :  { %v1422_v29 = vadd.f32 %v1421_v44, %v1316_v12  ;;  %v1459_v11 = vadd.f32 %v1458_v37, %v1317_v46 }
 0x1a3   :  { %v706_v35 = vadd.f32 %v705_v47, %v704_v4  ;;  %v743_v15 = vadd.f32 %v742_v45, %v741_v40  ;;  %v1350_v49 = vadd.f32 %v1349_v48, %v1348_v42  ;;  %v1387_v16 = vadd.f32 %v1386_v3, %v1385_v43 }
 0x1a4   :  { %v1423_v50 = vrot.slane %v1422_v29, 4  ;;  %v1460_v2 = vrot.slane %v1459_v11, 4 }
 0x1a5   :  { %v707_v51 = vrot.slane %v706_v35, 1  ;;  %v744_v52 = vrot.slane %v743_v15, 1  ;;  %v1351_v53 = vrot.slane %v1350_v49, 2  ;;  %v1388_v13 = vrot.slane %v1387_v16, 2 }
 0x1a6   :  { %v1424_v54 = vadd.f32 %v1423_v50, %v1422_v29  ;;  %v1461_v56 = vadd.f32 %v1460_v2, %v1459_v11 }
 0x1a7   :  { %v708_v57 = vadd.f32 %v707_v51, %v706_v35  ;;  %v745_v1 = vadd.f32 %v744_v52, %v743_v15  ;;  %v1352_v55 = vadd.f32 %v1351_v53, %v1350_v49  ;;  %v1389_v58 = vadd.f32 %v1388_v13, %v1387_v16 }
 0x1a8   :  { %v1425_v59 = vrot.slane %v1424_v54, 2  ;;  %v1462_v60 = vrot.slane %v1461_v56, 2 }
 0x1a9   :  { %v758_v61 = vcombine.low %v708_v57, %v745_v1  ;;  %v1353_v63 = vrot.slane %v1352_v55, 1  ;;  %v1390_v0 = vrot.slane %v1389_v58, 1 }
 0x1aa   :  { %v1426_v5 = vadd.f32 %v1425_v59, %v1424_v54  ;;  %v1463_v6 = vadd.f32 %v1462_v60, %v1461_v56 }
 0x1ab   :  { %v765_v7 = vrot.slane %v758_v61, %v1929_v41  ;;  %v1354_v10 = vadd.f32 %v1353_v63, %v1352_v55  ;;  %v1391_v8 = vadd.f32 %v1390_v0, %v1389_v58 }
 0x1ac   :  { %v1427_v14 = vrot.slane %v1426_v5, 1  ;;  %v1464_v17 = vrot.slane %v1463_v6, 1 }
 0x1ad   :  { %v770_v20 = vrot.slane %v765_v7, 7  ;;  %v1470_v18 = vcombine.low %v1354_v10, %v1391_v8 }
 0x1ae   :  { %v1428_v21 = vadd.f32 %v1427_v14, %v1426_v5  ;;  %v1465_v19 = vadd.f32 %v1464_v17, %v1463_v6 }
 0x1af   :  { %v1477_v24 = vrot.slane %v1470_v18, %v1929_v41  ;;  %v772_v25 = vsel %vm771_vm0, %v770_v20, %v1951_v62 }
 0x1b0   :  { %v1478_v26 = vcombine.low %v1428_v21, %v1465_v19  ;;  %v774_v22 = vsel %vm773_vm1, %v770_v20, %v772_v25 }
 0x1b1   :  { %v776_v28 = vsel %vm775_vm2, %v770_v20, %v774_v22 }
 0x1b2   :  { %v1485_v30 = vrot.slane %v1478_v26, %v1929_v41  ;;  %v778_v31 = vsel %vm777_vm3, %v770_v20, %v776_v28 }
 0x1b3   :  { %v780_v32 = vadd.f32 %v778_v31, %v469_v27 }
 0x1b4   :  { %v1488_v33 = vrot.slane %v1485_v30, 7 }
 0x1b5   :  { %781 = vst [vmem:[#allocation8] sm:$0xf] %v780_v32 }
 0x1b6   :  { %v1489_v23 = vsel %vm771_vm0, %v1488_v33, %v1477_v24 }
 0x1b7   :  { %1589 = shalt.err (!%p1586_p6)
}
 0x1b8   :  { %s1590_s17 = scalar_lea.hbm %s2464_s4, 64 }
 0x1b9   :  { %p1591_p7 = scmp.ne.s32.totalorder %s2464_s4, %s1590_s17  ;;  %p1594_p8 = scmp.lt.u32.totalorder %s1590_s17, %s2464_s4 }
 0x1bb   :  { %p1596_p9 = pnand %p1594_p8, %p1591_p7 }
 0x1bd   :  { %1599 = shalt.err (!%p1596_p9)
}
 0x1be   :  { %1515 = dma.vmem_to_hbm [thread:$0]  %s1513_s13, 64, %s2464_s4, [#allocation9]   ;;  %v1189_v41 = vld [vmem:[#allocation7] sm:$0xf]  ;;  %v1490_v62 = vsel %vm773_vm1, %v1488_v33, %v1489_v23 }
 0x1bf   :  { %s1635_s24 = smov [#allocation7]   ;;  %v1491_v34 = vsel %vm775_vm2, %v1488_v33, %v1490_v62 }
 0x1c0   :  { %s1502_s25 = sshll.u32 %s1635_s24, 4  ;;  %v1492_v38 = vsel %vm777_vm3, %v1488_v33, %v1491_v34  ;;  %s1503_s25 = int_to_ptr.vmem [resolvable:$true] %s1502_s25 }
 0x1c1   :  { %v1494_v9 = vadd.f32 %v1492_v38, %v1189_v41  ;;  %s1600_s26 = scalar_lea.vmem %s1503_s25, 64  ;;  %p1605_p11 = scmp.lt.s32.totalorder %s1503_s25, %s1503_s25 }
 0x1c2   :  { %p1601_p10 = scmp.ne.s32.totalorder %s1503_s25, %s1600_s26  ;;  %p1606_p12 = scmp.lt.s32.totalorder %s1600_s26, %s1600_s26 }
 0x1c3   :  { %1495 = vst [vmem:[#allocation7] sm:$0xf] %v1494_v9 }
 0x1c4   :  { %p1607_p13 = por %p1606_p12, %p1605_p11 }
 0x1c6   :  { %p1608_p0 = pnand %p1607_p13, %p1601_p10 }
 0x1c8   :  { %1611 = shalt.err (!%p1608_p0)
}
 0x1c9   :  { %s1612_s28 = scalar_lea.hbm %s2463_s3, 64 }
 0x1ca   :  { %p1613_p1 = scmp.ne.s32.totalorder %s2463_s3, %s1612_s28  ;;  %p1616_p2 = scmp.lt.u32.totalorder %s1612_s28, %s2463_s3 }
 0x1cc   :  { %p1618_p3 = pnand %p1616_p2, %p1613_p1 }
 0x1ce   :  { %1621 = shalt.err (!%p1618_p3)
}
 0x1cf   :  { %1505 = dma.vmem_to_hbm [thread:$0]  %s1503_s25, 64, %s2463_s3, [#allocation4]  }
 0x1d0   :  { %1626 = dma.done.wait [#allocation4], 64  }
 0x1d1   :  { %1627 = vsyncadd [#allocation4], 4294967232 }
 0x1d2   :  { %1628 = dma.done.wait [#allocation9], 64  }
 0x1d3   :  { %1629 = vsyncadd [#allocation9], 4294967232 }
 0x1d4   :  { %1522 = vsyncpa [#allocation3], 1 }
 0x1d5   :  { %1523 = vsyncpa [#allocation6], 1 }
 0x1d6   :  { %1524 = vsyncpa [#allocation4], 1 }
 0x1d7   :  { %1525 = vsyncpa [#allocation9], 1 }

</bundles_post_ra>
